<compile_context>
chip_gen: v7x
topology: tpu7x:2x2x1
jax: 0.10.0
libtpu: 0.0.40
codegen_flags: <defaults>
</compile_context>

<pallas_src>
import jax
import jax.numpy as jnp
from jax import lax
from jax.experimental import pallas as pl
from jax.experimental.pallas import tpu as pltpu


# ----------------------------------------------------------------------------
# Kernel: whole GRU (all T steps) + fc in a single invocation.
# ----------------------------------------------------------------------------
def gru_fc_kernel(x_ref,
                  w_ir_ref, w_iz_ref, w_in_ref,
                  w_hr_ref, w_hz_ref, w_hn_ref,
                  b_r_ref, b_z_ref, b_in_ref, b_hn_ref,
                  w_fc_ref, b_fc_ref,
                  out_ref):
    B, T, I = x_ref.shape
    H = w_hr_ref.shape[0]
    cd = w_ir_ref.dtype                      # bf16 compute dtype for MXU operands

    def dot(a, b):                           # MXU matmul, f32 accumulation
        return jnp.dot(a, b, preferred_element_type=jnp.float32)

    # ---- one-shot input projection for all (b, t), biases folded -----------
    x_flat = x_ref[...].astype(cd).reshape(B * T, I)          # (B*T, I)
    gx_r = (dot(x_flat, w_ir_ref[...]) + b_r_ref[...]).reshape(B, T, H)
    gx_z = (dot(x_flat, w_iz_ref[...]) + b_z_ref[...]).reshape(B, T, H)
    gx_n = (dot(x_flat, w_in_ref[...]) + b_in_ref[...]).reshape(B, T, H)

    # Hoist weight / bias loads out of the unrolled recurrence.
    w_hr = w_hr_ref[...]
    w_hz = w_hz_ref[...]
    w_hn = w_hn_ref[...]
    b_hn = b_hn_ref[...]

    # ---- serial recurrence, fully unrolled (static T, static time slices) --
    h = jnp.zeros((B, H), jnp.float32)       # carry stays f32
    for t in range(T):
        hd = h.astype(cd)                    # bf16 operand for the MXU only
        r = jax.nn.sigmoid(gx_r[:, t, :] + dot(hd, w_hr))
        z = jax.nn.sigmoid(gx_z[:, t, :] + dot(hd, w_hz))
        n = jnp.tanh(gx_n[:, t, :] + r * (dot(hd, w_hn) + b_hn))
        h = (1.0 - z) * n + z * h

    # ---- final classifier (runs once; dropout is identity in eval mode) ----
    out_ref[...] = (dot(h.astype(cd), w_fc_ref[...]) + b_fc_ref[...]
                    ).astype(out_ref.dtype)


# ----------------------------------------------------------------------------
# Wrapper
# ----------------------------------------------------------------------------
def single_gru_forward(x, p):
    """x: (B, T, I) float32, batch_first like PyTorch. Returns (B, num_classes)."""
    B, T, I = x.shape
    H = p["w_hr_t"].shape[0]
    C = p["w_fc_t"].shape[1]

    vmem = lambda: pl.BlockSpec(memory_space=pltpu.MemorySpace.VMEM)

    return pl.pallas_call(
        gru_fc_kernel,
        out_shape=jax.ShapeDtypeStruct((B, C), jnp.float32),
        in_specs=[vmem() for _ in range(13)],   # whole arrays, VMEM resident
        out_specs=vmem(),
    )(x,
      p["w_ir_t"], p["w_iz_t"], p["w_in_t"],
      p["w_hr_t"], p["w_hz_t"], p["w_hn_t"],
      p["b_r"], p["b_z"], p["b_in"], p["b_hn"],
      p["w_fc_t"], p["b_fc"])


# ----------------------------------------------------------------------------
# Parameter preparation (done once, outside the hot path):
#   torch-layout packed params -> per-gate transposed bf16 weights + folded biases.
# ----------------------------------------------------------------------------
def prepare_params(tp, compute_dtype=jnp.bfloat16):
    w_ih, w_hh = tp["weight_ih_l0"], tp["weight_hh_l0"]   # (3H, I), (3H, H)
    b_ih, b_hh = tp["bias_ih_l0"], tp["bias_hh_l0"]       # (3H,), (3H,)
    H = w_hh.shape[1]

    g = lambda a, i: a[i * H:(i + 1) * H]                 # gate slice [r, z, n]
    row = lambda v: v.reshape(1, -1).astype(jnp.float32)

    return {
        # per-gate weights, transposed to (in, out), bf16 for the MXU
        "w_ir_t": g(w_ih, 0).T.astype(compute_dtype),
        "w_iz_t": g(w_ih, 1).T.astype(compute_dtype),
        "w_in_t": g(w_ih, 2).T.astype(compute_dtype),
        "w_hr_t": g(w_hh, 0).T.astype(compute_dtype),
        "w_hz_t": g(w_hh, 1).T.astype(compute_dtype),
        "w_hn_t": g(w_hh, 2).T.astype(compute_dtype),
        # biases: r/z input+hidden biases and b_in fold into the precomputed
        # input projection; b_hn must stay inside r * (.), kept separately.
        "b_r":  row(g(b_ih, 0) + g(b_hh, 0)),
        "b_z":  row(g(b_ih, 1) + g(b_hh, 1)),
        "b_in": row(g(b_ih, 2)),
        "b_hn": row(g(b_hh, 2)),
        # classifier
        "w_fc_t": tp["fc_weight"].T.astype(compute_dtype),
        "b_fc":   row(tp["fc_bias"]),
    }


def init_torch_params(key, input_size, hidden_size, num_classes):
    """Deterministic init with torch.nn.GRU / nn.Linear shapes (gate order r,z,n)."""
    ks = jax.random.split(key, 6)
    k = 1.0 / jnp.sqrt(hidden_size)
    u = lambda kk, shape: jax.random.uniform(kk, shape, jnp.float32, -k, k)
    return {
        "weight_ih_l0": u(ks[0], (3 * hidden_size, input_size)),
        "weight_hh_l0": u(ks[1], (3 * hidden_size, hidden_size)),
        "bias_ih_l0":   u(ks[2], (3 * hidden_size,)),
        "bias_hh_l0":   u(ks[3], (3 * hidden_size,)),
        "fc_weight":    u(ks[4], (num_classes, hidden_size)),
        "fc_bias":      u(ks[5], (num_classes,)),
    }


# ----------------------------------------------------------------------------
# References
# ----------------------------------------------------------------------------
def single_gru_reference(x, p):
    """Pure-JAX reference mirroring the kernel's bf16-operand / f32-accum math."""
    cd = p["w_ir_t"].dtype
    B, T, I = x.shape
    H = p["w_hr_t"].shape[0]
    dot = lambda a, b: jnp.dot(a, b, preferred_element_type=jnp.float32)

    xf = x.astype(cd).reshape(B * T, I)
    gx_r = (dot(xf, p["w_ir_t"]) + p["b_r"]).reshape(B, T, H)
    gx_z = (dot(xf, p["w_iz_t"]) + p["b_z"]).reshape(B, T, H)
    gx_n = (dot(xf, p["w_in_t"]) + p["b_in"]).reshape(B, T, H)

    h = jnp.zeros((B, H), jnp.float32)
    for t in range(T):
        hd = h.astype(cd)
        r = jax.nn.sigmoid(gx_r[:, t, :] + dot(hd, p["w_hr_t"]))
        z = jax.nn.sigmoid(gx_z[:, t, :] + dot(hd, p["w_hz_t"]))
        n = jnp.tanh(gx_n[:, t, :] + r * (dot(hd, p["w_hn_t"]) + p["b_hn"]))
        h = (1.0 - z) * n + z * h
    return dot(h.astype(cd), p["w_fc_t"]) + p["b_fc"]


def single_gru_reference_f32(x, tp):
    """Torch-exact full-f32 reference from the packed GRU parameters (lax.scan)."""
    w_ih, w_hh = tp["weight_ih_l0"], tp["weight_hh_l0"]
    b_ih, b_hh = tp["bias_ih_l0"], tp["bias_hh_l0"]
    H = w_hh.shape[1]
    B = x.shape[0]

    def step(h, x_t):
        gx = x_t @ w_ih.T + b_ih
        gh = h @ w_hh.T + b_hh
        r = jax.nn.sigmoid(gx[:, :H] + gh[:, :H])
        z = jax.nn.sigmoid(gx[:, H:2 * H] + gh[:, H:2 * H])
        n = jnp.tanh(gx[:, 2 * H:] + r * gh[:, 2 * H:])
        return (1.0 - z) * n + z * h, None

    h0 = jnp.zeros((B, H), jnp.float32)
    h_T, _ = lax.scan(step, h0, jnp.transpose(x, (1, 0, 2)))
    return h_T @ tp["fc_weight"].T + tp["fc_bias"]


# ----------------------------------------------------------------------------
if __name__ == "__main__":
    # Small shapes consistent with the module: batch=2, seq=8, input=4, hidden=32, classes=5.
    B, T, I, H, C = 2, 8, 4, 32, 5

    key = jax.random.PRNGKey(0)
    kx, kp = jax.random.split(key)
    x = jax.random.normal(kx, (B, T, I), dtype=jnp.float32)
    torch_params = init_torch_params(kp, I, H, C)
    params = prepare_params(torch_params)

    out = single_gru_forward(x, params)
    jax.block_until_ready(out)
    assert out.shape == (B, C)

    # Strict check vs. a reference with identical bf16-operand matmuls.
    ref = single_gru_reference(x, params)
    assert jnp.allclose(out, ref, rtol=1e-3, atol=1e-3), \
        "Pallas output mismatch vs bf16-matched reference"

    # Loose check vs. the torch-exact f32 math (bounds bf16 operand rounding).
    ref32 = single_gru_reference_f32(x, torch_params)
    assert jnp.allclose(out, ref32, rtol=5e-2, atol=5e-2), \
        "Pallas output mismatch vs f32 torch-exact reference"

    print("KERNEL_OK")
</pallas_src>

<mosaic_0001>
module attributes {stable_mosaic.version = 11 : i64} {
  func.func @gru_fc_kernel(%arg0: memref<2x8x4xf32, #tpu.memory_space<vmem>>, %arg1: memref<4x32xbf16, #tpu.memory_space<vmem>>, %arg2: memref<4x32xbf16, #tpu.memory_space<vmem>>, %arg3: memref<4x32xbf16, #tpu.memory_space<vmem>>, %arg4: memref<32x32xbf16, #tpu.memory_space<vmem>>, %arg5: memref<32x32xbf16, #tpu.memory_space<vmem>>, %arg6: memref<32x32xbf16, #tpu.memory_space<vmem>>, %arg7: memref<1x32xf32, #tpu.memory_space<vmem>>, %arg8: memref<1x32xf32, #tpu.memory_space<vmem>>, %arg9: memref<1x32xf32, #tpu.memory_space<vmem>>, %arg10: memref<1x32xf32, #tpu.memory_space<vmem>>, %arg11: memref<32x5xbf16, #tpu.memory_space<vmem>>, %arg12: memref<1x5xf32, #tpu.memory_space<vmem>>, %arg13: memref<2x5xf32, #tpu.memory_space<vmem>>) attributes {dimension_semantics = [], scalar_prefetch = 0 : i64, scratch_operands = 0 : i64, tpu.core_type = #tpu.core_type<tc>} {
    %c0 = arith.constant 0 : index
    %c0_0 = arith.constant 0 : index
    %c0_1 = arith.constant 0 : index
    %0 = vector.load %arg0[%c0, %c0_0, %c0_1] : memref<2x8x4xf32, #tpu.memory_space<vmem>>, vector<2x8x4xf32>
    %1 = arith.truncf %0 : vector<2x8x4xf32> to vector<2x8x4xbf16>
    %2 = vector.shape_cast %1 : vector<2x8x4xbf16> to vector<16x4xbf16>
    %c0_2 = arith.constant 0 : index
    %c0_3 = arith.constant 0 : index
    %3 = vector.load %arg1[%c0_2, %c0_3] : memref<4x32xbf16, #tpu.memory_space<vmem>>, vector<4x32xbf16>
    %cst = arith.constant dense<0.000000e+00> : vector<16x32xf32>
    %4 = tpu.matmul %2, %3, %cst {dimension_numbers = #tpu.dot_dimension_numbers<[1], [0], [0], [1], [0, 0, 1, 1], [], []>} : vector<16x4xbf16>, vector<4x32xbf16>, vector<16x32xf32> -> vector<16x32xf32>
    %c0_4 = arith.constant 0 : index
    %c0_5 = arith.constant 0 : index
    %5 = vector.load %arg7[%c0_4, %c0_5] : memref<1x32xf32, #tpu.memory_space<vmem>>, vector<1x32xf32>
    %6 = vector.broadcast %5 : vector<1x32xf32> to vector<16x32xf32>
    %7 = arith.addf %4, %6 : vector<16x32xf32>
    %8 = vector.shape_cast %7 : vector<16x32xf32> to vector<2x8x32xf32>
    %c0_6 = arith.constant 0 : index
    %c0_7 = arith.constant 0 : index
    %9 = vector.load %arg2[%c0_6, %c0_7] : memref<4x32xbf16, #tpu.memory_space<vmem>>, vector<4x32xbf16>
    %cst_8 = arith.constant dense<0.000000e+00> : vector<16x32xf32>
    %10 = tpu.matmul %2, %9, %cst_8 {dimension_numbers = #tpu.dot_dimension_numbers<[1], [0], [0], [1], [0, 0, 1, 1], [], []>} : vector<16x4xbf16>, vector<4x32xbf16>, vector<16x32xf32> -> vector<16x32xf32>
    %c0_9 = arith.constant 0 : index
    %c0_10 = arith.constant 0 : index
    %11 = vector.load %arg8[%c0_9, %c0_10] : memref<1x32xf32, #tpu.memory_space<vmem>>, vector<1x32xf32>
    %12 = vector.broadcast %11 : vector<1x32xf32> to vector<16x32xf32>
    %13 = arith.addf %10, %12 : vector<16x32xf32>
    %14 = vector.shape_cast %13 : vector<16x32xf32> to vector<2x8x32xf32>
    %c0_11 = arith.constant 0 : index
    %c0_12 = arith.constant 0 : index
    %15 = vector.load %arg3[%c0_11, %c0_12] : memref<4x32xbf16, #tpu.memory_space<vmem>>, vector<4x32xbf16>
    %cst_13 = arith.constant dense<0.000000e+00> : vector<16x32xf32>
    %16 = tpu.matmul %2, %15, %cst_13 {dimension_numbers = #tpu.dot_dimension_numbers<[1], [0], [0], [1], [0, 0, 1, 1], [], []>} : vector<16x4xbf16>, vector<4x32xbf16>, vector<16x32xf32> -> vector<16x32xf32>
    %c0_14 = arith.constant 0 : index
    %c0_15 = arith.constant 0 : index
    %17 = vector.load %arg9[%c0_14, %c0_15] : memref<1x32xf32, #tpu.memory_space<vmem>>, vector<1x32xf32>
    %18 = vector.broadcast %17 : vector<1x32xf32> to vector<16x32xf32>
    %19 = arith.addf %16, %18 : vector<16x32xf32>
    %20 = vector.shape_cast %19 : vector<16x32xf32> to vector<2x8x32xf32>
    %c0_16 = arith.constant 0 : index
    %c0_17 = arith.constant 0 : index
    %21 = vector.load %arg4[%c0_16, %c0_17] : memref<32x32xbf16, #tpu.memory_space<vmem>>, vector<32x32xbf16>
    %c0_18 = arith.constant 0 : index
    %c0_19 = arith.constant 0 : index
    %22 = vector.load %arg5[%c0_18, %c0_19] : memref<32x32xbf16, #tpu.memory_space<vmem>>, vector<32x32xbf16>
    %c0_20 = arith.constant 0 : index
    %c0_21 = arith.constant 0 : index
    %23 = vector.load %arg6[%c0_20, %c0_21] : memref<32x32xbf16, #tpu.memory_space<vmem>>, vector<32x32xbf16>
    %c0_22 = arith.constant 0 : index
    %c0_23 = arith.constant 0 : index
    %24 = vector.load %arg10[%c0_22, %c0_23] : memref<1x32xf32, #tpu.memory_space<vmem>>, vector<1x32xf32>
    %cst_24 = arith.constant 0.000000e+00 : f32
    %25 = vector.broadcast %cst_24 : f32 to vector<2x32xf32>
    %26 = arith.truncf %25 : vector<2x32xf32> to vector<2x32xbf16>
    %27 = vector.extract_strided_slice %8 {offsets = [0, 0, 0], sizes = [2, 1, 32], strides = [1, 1, 1]} : vector<2x8x32xf32> to vector<2x1x32xf32>
    %28 = vector.shape_cast %27 : vector<2x1x32xf32> to vector<2x32xf32>
    %cst_25 = arith.constant dense<0.000000e+00> : vector<2x32xf32>
    %29 = tpu.matmul %26, %21, %cst_25 {dimension_numbers = #tpu.dot_dimension_numbers<[1], [0], [0], [1], [0, 0, 1, 1], [], []>} : vector<2x32xbf16>, vector<32x32xbf16>, vector<2x32xf32> -> vector<2x32xf32>
    %30 = arith.addf %28, %29 : vector<2x32xf32>
    %31 = arith.negf %30 : vector<2x32xf32>
    %32 = math.exp %31 : vector<2x32xf32>
    %cst_26 = arith.constant 1.000000e+00 : f32
    %33 = vector.broadcast %cst_26 : f32 to vector<2x32xf32>
    %34 = arith.addf %33, %32 : vector<2x32xf32>
    %35 = arith.divf %33, %34 : vector<2x32xf32>
    %36 = vector.extract_strided_slice %14 {offsets = [0, 0, 0], sizes = [2, 1, 32], strides = [1, 1, 1]} : vector<2x8x32xf32> to vector<2x1x32xf32>
    %37 = vector.shape_cast %36 : vector<2x1x32xf32> to vector<2x32xf32>
    %cst_27 = arith.constant dense<0.000000e+00> : vector<2x32xf32>
    %38 = tpu.matmul %26, %22, %cst_27 {dimension_numbers = #tpu.dot_dimension_numbers<[1], [0], [0], [1], [0, 0, 1, 1], [], []>} : vector<2x32xbf16>, vector<32x32xbf16>, vector<2x32xf32> -> vector<2x32xf32>
    %39 = arith.addf %37, %38 : vector<2x32xf32>
    %40 = arith.negf %39 : vector<2x32xf32>
    %41 = math.exp %40 : vector<2x32xf32>
    %cst_28 = arith.constant 1.000000e+00 : f32
    %42 = vector.broadcast %cst_28 : f32 to vector<2x32xf32>
    %43 = arith.addf %42, %41 : vector<2x32xf32>
    %44 = arith.divf %42, %43 : vector<2x32xf32>
    %45 = vector.extract_strided_slice %20 {offsets = [0, 0, 0], sizes = [2, 1, 32], strides = [1, 1, 1]} : vector<2x8x32xf32> to vector<2x1x32xf32>
    %46 = vector.shape_cast %45 : vector<2x1x32xf32> to vector<2x32xf32>
    %cst_29 = arith.constant dense<0.000000e+00> : vector<2x32xf32>
    %47 = tpu.matmul %26, %23, %cst_29 {dimension_numbers = #tpu.dot_dimension_numbers<[1], [0], [0], [1], [0, 0, 1, 1], [], []>} : vector<2x32xbf16>, vector<32x32xbf16>, vector<2x32xf32> -> vector<2x32xf32>
    %48 = vector.broadcast %24 : vector<1x32xf32> to vector<2x32xf32>
    %49 = arith.addf %47, %48 : vector<2x32xf32>
    %50 = arith.mulf %35, %49 : vector<2x32xf32>
    %51 = arith.addf %46, %50 : vector<2x32xf32>
    %52 = math.tanh %51 : vector<2x32xf32>
    %cst_30 = arith.constant 1.000000e+00 : f32
    %53 = vector.broadcast %cst_30 : f32 to vector<2x32xf32>
    %54 = arith.subf %53, %44 : vector<2x32xf32>
    %55 = arith.mulf %54, %52 : vector<2x32xf32>
    %56 = arith.mulf %44, %25 : vector<2x32xf32>
    %57 = arith.addf %55, %56 : vector<2x32xf32>
    %58 = arith.truncf %57 : vector<2x32xf32> to vector<2x32xbf16>
    %59 = vector.extract_strided_slice %8 {offsets = [0, 1, 0], sizes = [2, 1, 32], strides = [1, 1, 1]} : vector<2x8x32xf32> to vector<2x1x32xf32>
    %60 = vector.shape_cast %59 : vector<2x1x32xf32> to vector<2x32xf32>
    %cst_31 = arith.constant dense<0.000000e+00> : vector<2x32xf32>
    %61 = tpu.matmul %58, %21, %cst_31 {dimension_numbers = #tpu.dot_dimension_numbers<[1], [0], [0], [1], [0, 0, 1, 1], [], []>} : vector<2x32xbf16>, vector<32x32xbf16>, vector<2x32xf32> -> vector<2x32xf32>
    %62 = arith.addf %60, %61 : vector<2x32xf32>
    %63 = arith.negf %62 : vector<2x32xf32>
    %64 = math.exp %63 : vector<2x32xf32>
    %cst_32 = arith.constant 1.000000e+00 : f32
    %65 = vector.broadcast %cst_32 : f32 to vector<2x32xf32>
    %66 = arith.addf %65, %64 : vector<2x32xf32>
    %67 = arith.divf %65, %66 : vector<2x32xf32>
    %68 = vector.extract_strided_slice %14 {offsets = [0, 1, 0], sizes = [2, 1, 32], strides = [1, 1, 1]} : vector<2x8x32xf32> to vector<2x1x32xf32>
    %69 = vector.shape_cast %68 : vector<2x1x32xf32> to vector<2x32xf32>
    %cst_33 = arith.constant dense<0.000000e+00> : vector<2x32xf32>
    %70 = tpu.matmul %58, %22, %cst_33 {dimension_numbers = #tpu.dot_dimension_numbers<[1], [0], [0], [1], [0, 0, 1, 1], [], []>} : vector<2x32xbf16>, vector<32x32xbf16>, vector<2x32xf32> -> vector<2x32xf32>
    %71 = arith.addf %69, %70 : vector<2x32xf32>
    %72 = arith.negf %71 : vector<2x32xf32>
    %73 = math.exp %72 : vector<2x32xf32>
    %cst_34 = arith.constant 1.000000e+00 : f32
    %74 = vector.broadcast %cst_34 : f32 to vector<2x32xf32>
    %75 = arith.addf %74, %73 : vector<2x32xf32>
    %76 = arith.divf %74, %75 : vector<2x32xf32>
    %77 = vector.extract_strided_slice %20 {offsets = [0, 1, 0], sizes = [2, 1, 32], strides = [1, 1, 1]} : vector<2x8x32xf32> to vector<2x1x32xf32>
    %78 = vector.shape_cast %77 : vector<2x1x32xf32> to vector<2x32xf32>
    %cst_35 = arith.constant dense<0.000000e+00> : vector<2x32xf32>
    %79 = tpu.matmul %58, %23, %cst_35 {dimension_numbers = #tpu.dot_dimension_numbers<[1], [0], [0], [1], [0, 0, 1, 1], [], []>} : vector<2x32xbf16>, vector<32x32xbf16>, vector<2x32xf32> -> vector<2x32xf32>
    %80 = vector.broadcast %24 : vector<1x32xf32> to vector<2x32xf32>
    %81 = arith.addf %79, %80 : vector<2x32xf32>
    %82 = arith.mulf %67, %81 : vector<2x32xf32>
    %83 = arith.addf %78, %82 : vector<2x32xf32>
    %84 = math.tanh %83 : vector<2x32xf32>
    %cst_36 = arith.constant 1.000000e+00 : f32
    %85 = vector.broadcast %cst_36 : f32 to vector<2x32xf32>
    %86 = arith.subf %85, %76 : vector<2x32xf32>
    %87 = arith.mulf %86, %84 : vector<2x32xf32>
    %88 = arith.mulf %76, %57 : vector<2x32xf32>
    %89 = arith.addf %87, %88 : vector<2x32xf32>
    %90 = arith.truncf %89 : vector<2x32xf32> to vector<2x32xbf16>
    %91 = vector.extract_strided_slice %8 {offsets = [0, 2, 0], sizes = [2, 1, 32], strides = [1, 1, 1]} : vector<2x8x32xf32> to vector<2x1x32xf32>
    %92 = vector.shape_cast %91 : vector<2x1x32xf32> to vector<2x32xf32>
    %cst_37 = arith.constant dense<0.000000e+00> : vector<2x32xf32>
    %93 = tpu.matmul %90, %21, %cst_37 {dimension_numbers = #tpu.dot_dimension_numbers<[1], [0], [0], [1], [0, 0, 1, 1], [], []>} : vector<2x32xbf16>, vector<32x32xbf16>, vector<2x32xf32> -> vector<2x32xf32>
    %94 = arith.addf %92, %93 : vector<2x32xf32>
    %95 = arith.negf %94 : vector<2x32xf32>
    %96 = math.exp %95 : vector<2x32xf32>
    %cst_38 = arith.constant 1.000000e+00 : f32
    %97 = vector.broadcast %cst_38 : f32 to vector<2x32xf32>
    %98 = arith.addf %97, %96 : vector<2x32xf32>
    %99 = arith.divf %97, %98 : vector<2x32xf32>
    %100 = vector.extract_strided_slice %14 {offsets = [0, 2, 0], sizes = [2, 1, 32], strides = [1, 1, 1]} : vector<2x8x32xf32> to vector<2x1x32xf32>
    %101 = vector.shape_cast %100 : vector<2x1x32xf32> to vector<2x32xf32>
    %cst_39 = arith.constant dense<0.000000e+00> : vector<2x32xf32>
    %102 = tpu.matmul %90, %22, %cst_39 {dimension_numbers = #tpu.dot_dimension_numbers<[1], [0], [0], [1], [0, 0, 1, 1], [], []>} : vector<2x32xbf16>, vector<32x32xbf16>, vector<2x32xf32> -> vector<2x32xf32>
    %103 = arith.addf %101, %102 : vector<2x32xf32>
    %104 = arith.negf %103 : vector<2x32xf32>
    %105 = math.exp %104 : vector<2x32xf32>
    %cst_40 = arith.constant 1.000000e+00 : f32
    %106 = vector.broadcast %cst_40 : f32 to vector<2x32xf32>
    %107 = arith.addf %106, %105 : vector<2x32xf32>
    %108 = arith.divf %106, %107 : vector<2x32xf32>
    %109 = vector.extract_strided_slice %20 {offsets = [0, 2, 0], sizes = [2, 1, 32], strides = [1, 1, 1]} : vector<2x8x32xf32> to vector<2x1x32xf32>
    %110 = vector.shape_cast %109 : vector<2x1x32xf32> to vector<2x32xf32>
    %cst_41 = arith.constant dense<0.000000e+00> : vector<2x32xf32>
    %111 = tpu.matmul %90, %23, %cst_41 {dimension_numbers = #tpu.dot_dimension_numbers<[1], [0], [0], [1], [0, 0, 1, 1], [], []>} : vector<2x32xbf16>, vector<32x32xbf16>, vector<2x32xf32> -> vector<2x32xf32>
    %112 = vector.broadcast %24 : vector<1x32xf32> to vector<2x32xf32>
    %113 = arith.addf %111, %112 : vector<2x32xf32>
    %114 = arith.mulf %99, %113 : vector<2x32xf32>
    %115 = arith.addf %110, %114 : vector<2x32xf32>
    %116 = math.tanh %115 : vector<2x32xf32>
    %cst_42 = arith.constant 1.000000e+00 : f32
    %117 = vector.broadcast %cst_42 : f32 to vector<2x32xf32>
    %118 = arith.subf %117, %108 : vector<2x32xf32>
    %119 = arith.mulf %118, %116 : vector<2x32xf32>
    %120 = arith.mulf %108, %89 : vector<2x32xf32>
    %121 = arith.addf %119, %120 : vector<2x32xf32>
    %122 = arith.truncf %121 : vector<2x32xf32> to vector<2x32xbf16>
    %123 = vector.extract_strided_slice %8 {offsets = [0, 3, 0], sizes = [2, 1, 32], strides = [1, 1, 1]} : vector<2x8x32xf32> to vector<2x1x32xf32>
    %124 = vector.shape_cast %123 : vector<2x1x32xf32> to vector<2x32xf32>
    %cst_43 = arith.constant dense<0.000000e+00> : vector<2x32xf32>
    %125 = tpu.matmul %122, %21, %cst_43 {dimension_numbers = #tpu.dot_dimension_numbers<[1], [0], [0], [1], [0, 0, 1, 1], [], []>} : vector<2x32xbf16>, vector<32x32xbf16>, vector<2x32xf32> -> vector<2x32xf32>
    %126 = arith.addf %124, %125 : vector<2x32xf32>
    %127 = arith.negf %126 : vector<2x32xf32>
    %128 = math.exp %127 : vector<2x32xf32>
    %cst_44 = arith.constant 1.000000e+00 : f32
    %129 = vector.broadcast %cst_44 : f32 to vector<2x32xf32>
    %130 = arith.addf %129, %128 : vector<2x32xf32>
    %131 = arith.divf %129, %130 : vector<2x32xf32>
    %132 = vector.extract_strided_slice %14 {offsets = [0, 3, 0], sizes = [2, 1, 32], strides = [1, 1, 1]} : vector<2x8x32xf32> to vector<2x1x32xf32>
    %133 = vector.shape_cast %132 : vector<2x1x32xf32> to vector<2x32xf32>
    %cst_45 = arith.constant dense<0.000000e+00> : vector<2x32xf32>
    %134 = tpu.matmul %122, %22, %cst_45 {dimension_numbers = #tpu.dot_dimension_numbers<[1], [0], [0], [1], [0, 0, 1, 1], [], []>} : vector<2x32xbf16>, vector<32x32xbf16>, vector<2x32xf32> -> vector<2x32xf32>
    %135 = arith.addf %133, %134 : vector<2x32xf32>
    %136 = arith.negf %135 : vector<2x32xf32>
    %137 = math.exp %136 : vector<2x32xf32>
    %cst_46 = arith.constant 1.000000e+00 : f32
    %138 = vector.broadcast %cst_46 : f32 to vector<2x32xf32>
    %139 = arith.addf %138, %137 : vector<2x32xf32>
    %140 = arith.divf %138, %139 : vector<2x32xf32>
    %141 = vector.extract_strided_slice %20 {offsets = [0, 3, 0], sizes = [2, 1, 32], strides = [1, 1, 1]} : vector<2x8x32xf32> to vector<2x1x32xf32>
    %142 = vector.shape_cast %141 : vector<2x1x32xf32> to vector<2x32xf32>
    %cst_47 = arith.constant dense<0.000000e+00> : vector<2x32xf32>
    %143 = tpu.matmul %122, %23, %cst_47 {dimension_numbers = #tpu.dot_dimension_numbers<[1], [0], [0], [1], [0, 0, 1, 1], [], []>} : vector<2x32xbf16>, vector<32x32xbf16>, vector<2x32xf32> -> vector<2x32xf32>
    %144 = vector.broadcast %24 : vector<1x32xf32> to vector<2x32xf32>
    %145 = arith.addf %143, %144 : vector<2x32xf32>
    %146 = arith.mulf %131, %145 : vector<2x32xf32>
    %147 = arith.addf %142, %146 : vector<2x32xf32>
    %148 = math.tanh %147 : vector<2x32xf32>
    %cst_48 = arith.constant 1.000000e+00 : f32
    %149 = vector.broadcast %cst_48 : f32 to vector<2x32xf32>
    %150 = arith.subf %149, %140 : vector<2x32xf32>
    %151 = arith.mulf %150, %148 : vector<2x32xf32>
    %152 = arith.mulf %140, %121 : vector<2x32xf32>
    %153 = arith.addf %151, %152 : vector<2x32xf32>
    %154 = arith.truncf %153 : vector<2x32xf32> to vector<2x32xbf16>
    %155 = vector.extract_strided_slice %8 {offsets = [0, 4, 0], sizes = [2, 1, 32], strides = [1, 1, 1]} : vector<2x8x32xf32> to vector<2x1x32xf32>
    %156 = vector.shape_cast %155 : vector<2x1x32xf32> to vector<2x32xf32>
    %cst_49 = arith.constant dense<0.000000e+00> : vector<2x32xf32>
    %157 = tpu.matmul %154, %21, %cst_49 {dimension_numbers = #tpu.dot_dimension_numbers<[1], [0], [0], [1], [0, 0, 1, 1], [], []>} : vector<2x32xbf16>, vector<32x32xbf16>, vector<2x32xf32> -> vector<2x32xf32>
    %158 = arith.addf %156, %157 : vector<2x32xf32>
    %159 = arith.negf %158 : vector<2x32xf32>
    %160 = math.exp %159 : vector<2x32xf32>
    %cst_50 = arith.constant 1.000000e+00 : f32
    %161 = vector.broadcast %cst_50 : f32 to vector<2x32xf32>
    %162 = arith.addf %161, %160 : vector<2x32xf32>
    %163 = arith.divf %161, %162 : vector<2x32xf32>
    %164 = vector.extract_strided_slice %14 {offsets = [0, 4, 0], sizes = [2, 1, 32], strides = [1, 1, 1]} : vector<2x8x32xf32> to vector<2x1x32xf32>
    %165 = vector.shape_cast %164 : vector<2x1x32xf32> to vector<2x32xf32>
    %cst_51 = arith.constant dense<0.000000e+00> : vector<2x32xf32>
    %166 = tpu.matmul %154, %22, %cst_51 {dimension_numbers = #tpu.dot_dimension_numbers<[1], [0], [0], [1], [0, 0, 1, 1], [], []>} : vector<2x32xbf16>, vector<32x32xbf16>, vector<2x32xf32> -> vector<2x32xf32>
    %167 = arith.addf %165, %166 : vector<2x32xf32>
    %168 = arith.negf %167 : vector<2x32xf32>
    %169 = math.exp %168 : vector<2x32xf32>
    %cst_52 = arith.constant 1.000000e+00 : f32
    %170 = vector.broadcast %cst_52 : f32 to vector<2x32xf32>
    %171 = arith.addf %170, %169 : vector<2x32xf32>
    %172 = arith.divf %170, %171 : vector<2x32xf32>
    %173 = vector.extract_strided_slice %20 {offsets = [0, 4, 0], sizes = [2, 1, 32], strides = [1, 1, 1]} : vector<2x8x32xf32> to vector<2x1x32xf32>
    %174 = vector.shape_cast %173 : vector<2x1x32xf32> to vector<2x32xf32>
    %cst_53 = arith.constant dense<0.000000e+00> : vector<2x32xf32>
    %175 = tpu.matmul %154, %23, %cst_53 {dimension_numbers = #tpu.dot_dimension_numbers<[1], [0], [0], [1], [0, 0, 1, 1], [], []>} : vector<2x32xbf16>, vector<32x32xbf16>, vector<2x32xf32> -> vector<2x32xf32>
    %176 = vector.broadcast %24 : vector<1x32xf32> to vector<2x32xf32>
    %177 = arith.addf %175, %176 : vector<2x32xf32>
    %178 = arith.mulf %163, %177 : vector<2x32xf32>
    %179 = arith.addf %174, %178 : vector<2x32xf32>
    %180 = math.tanh %179 : vector<2x32xf32>
    %cst_54 = arith.constant 1.000000e+00 : f32
    %181 = vector.broadcast %cst_54 : f32 to vector<2x32xf32>
    %182 = arith.subf %181, %172 : vector<2x32xf32>
    %183 = arith.mulf %182, %180 : vector<2x32xf32>
    %184 = arith.mulf %172, %153 : vector<2x32xf32>
    %185 = arith.addf %183, %184 : vector<2x32xf32>
    %186 = arith.truncf %185 : vector<2x32xf32> to vector<2x32xbf16>
    %187 = vector.extract_strided_slice %8 {offsets = [0, 5, 0], sizes = [2, 1, 32], strides = [1, 1, 1]} : vector<2x8x32xf32> to vector<2x1x32xf32>
    %188 = vector.shape_cast %187 : vector<2x1x32xf32> to vector<2x32xf32>
    %cst_55 = arith.constant dense<0.000000e+00> : vector<2x32xf32>
    %189 = tpu.matmul %186, %21, %cst_55 {dimension_numbers = #tpu.dot_dimension_numbers<[1], [0], [0], [1], [0, 0, 1, 1], [], []>} : vector<2x32xbf16>, vector<32x32xbf16>, vector<2x32xf32> -> vector<2x32xf32>
    %190 = arith.addf %188, %189 : vector<2x32xf32>
    %191 = arith.negf %190 : vector<2x32xf32>
    %192 = math.exp %191 : vector<2x32xf32>
    %cst_56 = arith.constant 1.000000e+00 : f32
    %193 = vector.broadcast %cst_56 : f32 to vector<2x32xf32>
    %194 = arith.addf %193, %192 : vector<2x32xf32>
    %195 = arith.divf %193, %194 : vector<2x32xf32>
    %196 = vector.extract_strided_slice %14 {offsets = [0, 5, 0], sizes = [2, 1, 32], strides = [1, 1, 1]} : vector<2x8x32xf32> to vector<2x1x32xf32>
    %197 = vector.shape_cast %196 : vector<2x1x32xf32> to vector<2x32xf32>
    %cst_57 = arith.constant dense<0.000000e+00> : vector<2x32xf32>
    %198 = tpu.matmul %186, %22, %cst_57 {dimension_numbers = #tpu.dot_dimension_numbers<[1], [0], [0], [1], [0, 0, 1, 1], [], []>} : vector<2x32xbf16>, vector<32x32xbf16>, vector<2x32xf32> -> vector<2x32xf32>
    %199 = arith.addf %197, %198 : vector<2x32xf32>
    %200 = arith.negf %199 : vector<2x32xf32>
    %201 = math.exp %200 : vector<2x32xf32>
    %cst_58 = arith.constant 1.000000e+00 : f32
    %202 = vector.broadcast %cst_58 : f32 to vector<2x32xf32>
    %203 = arith.addf %202, %201 : vector<2x32xf32>
    %204 = arith.divf %202, %203 : vector<2x32xf32>
    %205 = vector.extract_strided_slice %20 {offsets = [0, 5, 0], sizes = [2, 1, 32], strides = [1, 1, 1]} : vector<2x8x32xf32> to vector<2x1x32xf32>
    %206 = vector.shape_cast %205 : vector<2x1x32xf32> to vector<2x32xf32>
    %cst_59 = arith.constant dense<0.000000e+00> : vector<2x32xf32>
    %207 = tpu.matmul %186, %23, %cst_59 {dimension_numbers = #tpu.dot_dimension_numbers<[1], [0], [0], [1], [0, 0, 1, 1], [], []>} : vector<2x32xbf16>, vector<32x32xbf16>, vector<2x32xf32> -> vector<2x32xf32>
    %208 = vector.broadcast %24 : vector<1x32xf32> to vector<2x32xf32>
    %209 = arith.addf %207, %208 : vector<2x32xf32>
    %210 = arith.mulf %195, %209 : vector<2x32xf32>
    %211 = arith.addf %206, %210 : vector<2x32xf32>
    %212 = math.tanh %211 : vector<2x32xf32>
    %cst_60 = arith.constant 1.000000e+00 : f32
    %213 = vector.broadcast %cst_60 : f32 to vector<2x32xf32>
    %214 = arith.subf %213, %204 : vector<2x32xf32>
    %215 = arith.mulf %214, %212 : vector<2x32xf32>
    %216 = arith.mulf %204, %185 : vector<2x32xf32>
    %217 = arith.addf %215, %216 : vector<2x32xf32>
    %218 = arith.truncf %217 : vector<2x32xf32> to vector<2x32xbf16>
    %219 = vector.extract_strided_slice %8 {offsets = [0, 6, 0], sizes = [2, 1, 32], strides = [1, 1, 1]} : vector<2x8x32xf32> to vector<2x1x32xf32>
    %220 = vector.shape_cast %219 : vector<2x1x32xf32> to vector<2x32xf32>
    %cst_61 = arith.constant dense<0.000000e+00> : vector<2x32xf32>
    %221 = tpu.matmul %218, %21, %cst_61 {dimension_numbers = #tpu.dot_dimension_numbers<[1], [0], [0], [1], [0, 0, 1, 1], [], []>} : vector<2x32xbf16>, vector<32x32xbf16>, vector<2x32xf32> -> vector<2x32xf32>
    %222 = arith.addf %220, %221 : vector<2x32xf32>
    %223 = arith.negf %222 : vector<2x32xf32>
    %224 = math.exp %223 : vector<2x32xf32>
    %cst_62 = arith.constant 1.000000e+00 : f32
    %225 = vector.broadcast %cst_62 : f32 to vector<2x32xf32>
    %226 = arith.addf %225, %224 : vector<2x32xf32>
    %227 = arith.divf %225, %226 : vector<2x32xf32>
    %228 = vector.extract_strided_slice %14 {offsets = [0, 6, 0], sizes = [2, 1, 32], strides = [1, 1, 1]} : vector<2x8x32xf32> to vector<2x1x32xf32>
    %229 = vector.shape_cast %228 : vector<2x1x32xf32> to vector<2x32xf32>
    %cst_63 = arith.constant dense<0.000000e+00> : vector<2x32xf32>
    %230 = tpu.matmul %218, %22, %cst_63 {dimension_numbers = #tpu.dot_dimension_numbers<[1], [0], [0], [1], [0, 0, 1, 1], [], []>} : vector<2x32xbf16>, vector<32x32xbf16>, vector<2x32xf32> -> vector<2x32xf32>
    %231 = arith.addf %229, %230 : vector<2x32xf32>
    %232 = arith.negf %231 : vector<2x32xf32>
    %233 = math.exp %232 : vector<2x32xf32>
    %cst_64 = arith.constant 1.000000e+00 : f32
    %234 = vector.broadcast %cst_64 : f32 to vector<2x32xf32>
    %235 = arith.addf %234, %233 : vector<2x32xf32>
    %236 = arith.divf %234, %235 : vector<2x32xf32>
    %237 = vector.extract_strided_slice %20 {offsets = [0, 6, 0], sizes = [2, 1, 32], strides = [1, 1, 1]} : vector<2x8x32xf32> to vector<2x1x32xf32>
    %238 = vector.shape_cast %237 : vector<2x1x32xf32> to vector<2x32xf32>
    %cst_65 = arith.constant dense<0.000000e+00> : vector<2x32xf32>
    %239 = tpu.matmul %218, %23, %cst_65 {dimension_numbers = #tpu.dot_dimension_numbers<[1], [0], [0], [1], [0, 0, 1, 1], [], []>} : vector<2x32xbf16>, vector<32x32xbf16>, vector<2x32xf32> -> vector<2x32xf32>
    %240 = vector.broadcast %24 : vector<1x32xf32> to vector<2x32xf32>
    %241 = arith.addf %239, %240 : vector<2x32xf32>
    %242 = arith.mulf %227, %241 : vector<2x32xf32>
    %243 = arith.addf %238, %242 : vector<2x32xf32>
    %244 = math.tanh %243 : vector<2x32xf32>
    %cst_66 = arith.constant 1.000000e+00 : f32
    %245 = vector.broadcast %cst_66 : f32 to vector<2x32xf32>
    %246 = arith.subf %245, %236 : vector<2x32xf32>
    %247 = arith.mulf %246, %244 : vector<2x32xf32>
    %248 = arith.mulf %236, %217 : vector<2x32xf32>
    %249 = arith.addf %247, %248 : vector<2x32xf32>
    %250 = arith.truncf %249 : vector<2x32xf32> to vector<2x32xbf16>
    %251 = vector.extract_strided_slice %8 {offsets = [0, 7, 0], sizes = [2, 1, 32], strides = [1, 1, 1]} : vector<2x8x32xf32> to vector<2x1x32xf32>
    %252 = vector.shape_cast %251 : vector<2x1x32xf32> to vector<2x32xf32>
    %cst_67 = arith.constant dense<0.000000e+00> : vector<2x32xf32>
    %253 = tpu.matmul %250, %21, %cst_67 {dimension_numbers = #tpu.dot_dimension_numbers<[1], [0], [0], [1], [0, 0, 1, 1], [], []>} : vector<2x32xbf16>, vector<32x32xbf16>, vector<2x32xf32> -> vector<2x32xf32>
    %254 = arith.addf %252, %253 : vector<2x32xf32>
    %255 = arith.negf %254 : vector<2x32xf32>
    %256 = math.exp %255 : vector<2x32xf32>
    %cst_68 = arith.constant 1.000000e+00 : f32
    %257 = vector.broadcast %cst_68 : f32 to vector<2x32xf32>
    %258 = arith.addf %257, %256 : vector<2x32xf32>
    %259 = arith.divf %257, %258 : vector<2x32xf32>
    %260 = vector.extract_strided_slice %14 {offsets = [0, 7, 0], sizes = [2, 1, 32], strides = [1, 1, 1]} : vector<2x8x32xf32> to vector<2x1x32xf32>
    %261 = vector.shape_cast %260 : vector<2x1x32xf32> to vector<2x32xf32>
    %cst_69 = arith.constant dense<0.000000e+00> : vector<2x32xf32>
    %262 = tpu.matmul %250, %22, %cst_69 {dimension_numbers = #tpu.dot_dimension_numbers<[1], [0], [0], [1], [0, 0, 1, 1], [], []>} : vector<2x32xbf16>, vector<32x32xbf16>, vector<2x32xf32> -> vector<2x32xf32>
    %263 = arith.addf %261, %262 : vector<2x32xf32>
    %264 = arith.negf %263 : vector<2x32xf32>
    %265 = math.exp %264 : vector<2x32xf32>
    %cst_70 = arith.constant 1.000000e+00 : f32
    %266 = vector.broadcast %cst_70 : f32 to vector<2x32xf32>
    %267 = arith.addf %266, %265 : vector<2x32xf32>
    %268 = arith.divf %266, %267 : vector<2x32xf32>
    %269 = vector.extract_strided_slice %20 {offsets = [0, 7, 0], sizes = [2, 1, 32], strides = [1, 1, 1]} : vector<2x8x32xf32> to vector<2x1x32xf32>
    %270 = vector.shape_cast %269 : vector<2x1x32xf32> to vector<2x32xf32>
    %cst_71 = arith.constant dense<0.000000e+00> : vector<2x32xf32>
    %271 = tpu.matmul %250, %23, %cst_71 {dimension_numbers = #tpu.dot_dimension_numbers<[1], [0], [0], [1], [0, 0, 1, 1], [], []>} : vector<2x32xbf16>, vector<32x32xbf16>, vector<2x32xf32> -> vector<2x32xf32>
    %272 = vector.broadcast %24 : vector<1x32xf32> to vector<2x32xf32>
    %273 = arith.addf %271, %272 : vector<2x32xf32>
    %274 = arith.mulf %259, %273 : vector<2x32xf32>
    %275 = arith.addf %270, %274 : vector<2x32xf32>
    %276 = math.tanh %275 : vector<2x32xf32>
    %cst_72 = arith.constant 1.000000e+00 : f32
    %277 = vector.broadcast %cst_72 : f32 to vector<2x32xf32>
    %278 = arith.subf %277, %268 : vector<2x32xf32>
    %279 = arith.mulf %278, %276 : vector<2x32xf32>
    %280 = arith.mulf %268, %249 : vector<2x32xf32>
    %281 = arith.addf %279, %280 : vector<2x32xf32>
    %282 = arith.truncf %281 : vector<2x32xf32> to vector<2x32xbf16>
    %c0_73 = arith.constant 0 : index
    %c0_74 = arith.constant 0 : index
    %283 = vector.load %arg11[%c0_73, %c0_74] : memref<32x5xbf16, #tpu.memory_space<vmem>>, vector<32x5xbf16>
    %cst_75 = arith.constant dense<0.000000e+00> : vector<2x5xf32>
    %284 = tpu.matmul %282, %283, %cst_75 {dimension_numbers = #tpu.dot_dimension_numbers<[1], [0], [0], [1], [0, 0, 1, 1], [], []>} : vector<2x32xbf16>, vector<32x5xbf16>, vector<2x5xf32> -> vector<2x5xf32>
    %c0_76 = arith.constant 0 : index
    %c0_77 = arith.constant 0 : index
    %285 = vector.load %arg12[%c0_76, %c0_77] : memref<1x5xf32, #tpu.memory_space<vmem>>, vector<1x5xf32>
    %286 = vector.broadcast %285 : vector<1x5xf32> to vector<2x5xf32>
    %287 = arith.addf %284, %286 : vector<2x5xf32>
    %c0_78 = arith.constant 0 : index
    %c0_79 = arith.constant 0 : index
    %288 = vector.load %arg13[%c0_78, %c0_79] : memref<2x5xf32, #tpu.memory_space<vmem>>, vector<2x5xf32>
    tpu.vector_store %arg13[%c0_78, %c0_79], %287 {strides = array<i32>} : memref<2x5xf32, #tpu.memory_space<vmem>>, vector<2x5xf32>,
    return
  }
}

</mosaic_0001>

<bundles_post_ra>
// kernel: tpu_custom_call.1
= control target key start
LH: loop header
LB: loop body
LE: loop exit
PB: predicated region body
PF: predicated region fallthrough
CT: control target
= control target key end

     0   :  { %18 = vsyncpa [#allocation3], 0  ;;  %s3087_s0 = inlined_call_operand.vmem [shape: f32[2,8,4], index: 0, kind: input, shape index: {}]   ;;  %s3088_s1 = inlined_call_operand.vmem [shape: bf16[4,32], index: 1, kind: input, shape index: {}]   ;;  %s3089_s2 = inlined_call_operand.hbm [shape: bf16[4,32], index: 2, kind: input, shape index: {}]   ;;  %s3090_s3 = inlined_call_operand.hbm [shape: bf16[4,32], index: 3, kind: input, shape index: {}]   ;;  %s3091_s4 = inlined_call_operand.vmem [shape: bf16[32,32], index: 4, kind: input, shape index: {}]   ;;  %s3092_s5 = inlined_call_operand.vmem [shape: bf16[32,32], index: 5, kind: input, shape index: {}]   ;;  %s3093_s6 = inlined_call_operand.vmem [shape: bf16[32,32], index: 6, kind: input, shape index: {}]   ;;  %s3094_s7 = inlined_call_operand.vmem [shape: f32[1,32], index: 7, kind: input, shape index: {}]   ;;  %s3095_s8 = inlined_call_operand.vmem [shape: f32[1,32], index: 8, kind: input, shape index: {}]   ;;  %s3096_s9 = inlined_call_operand.vmem [shape: f32[1,32], index: 9, kind: input, shape index: {}]   ;;  %s3097_s10 = inlined_call_operand.vmem [shape: f32[1,32], index: 10, kind: input, shape index: {}]   ;;  %s3098_s11 = inlined_call_operand.vmem [shape: bf16[32,5], index: 11, kind: input, shape index: {}]   ;;  %s3099_s12 = inlined_call_operand.vmem [shape: f32[1,5], index: 12, kind: input, shape index: {}]   ;;  %s3100_s13 = inlined_call_operand.hbm [shape: f32[2,5], index: 13, kind: output, shape index: {}]  }
   0x1   :  { %19 = vsyncpa [#allocation6], 0 }
   0x2   :  { %20 = vsyncpa [#allocation4], 0  ;;  %s2559_s25 = smov [#allocation2]   ;;  %s2560_s27 = smov [#allocation5]  }
   0x3   :  { %s31_s26 = sshll.u32 %s2559_s25, 4  ;;  %s41_s28 = sshll.u32 %s2560_s27, 4  ;;  %s32_s26 = int_to_ptr.vmem [resolvable:$true] %s31_s26  ;;  %s42_s28 = int_to_ptr.vmem [resolvable:$true] %s41_s28 }
   0x4   :  { %s2487_s14 = scalar_lea.hbm %s3089_s2, 32 }
   0x5   :  { %p2488_p0 = scmp.ne.s32.totalorder %s3089_s2, %s2487_s14  ;;  %p2491_p1 = scmp.lt.u32.totalorder %s2487_s14, %s3089_s2 }
   0x7   :  { %p2493_p2 = pnand %p2491_p1, %p2488_p0 }
   0x9   :  { %2496 = shalt.err (!%p2493_p2)
}
   0xa   :  { %s2497_s19 = scalar_lea.vmem %s32_s26, 32  ;;  %p2502_p4 = scmp.lt.s32.totalorder %s32_s26, %s32_s26 }
   0xb   :  { %p2498_p3 = scmp.ne.s32.totalorder %s32_s26, %s2497_s19  ;;  %p2503_p5 = scmp.lt.s32.totalorder %s2497_s19, %s2497_s19 }
   0xd   :  { %p2504_p6 = por %p2503_p5, %p2502_p4 }
   0xf   :  { %p2505_p7 = pnand %p2504_p6, %p2498_p3 }
  0x11   :  { %2508 = shalt.err (!%p2505_p7)
}
  0x12   :  { %34 = dma.hbm_to_vmem [thread:$0]  %s3089_s2, 32, %s32_s26, [#allocation3]  }
  0x13   :  { %s2509_s24 = scalar_lea.hbm %s3090_s3, 32 }
  0x14   :  { %p2510_p8 = scmp.ne.s32.totalorder %s3090_s3, %s2509_s24  ;;  %p2513_p9 = scmp.lt.u32.totalorder %s2509_s24, %s3090_s3 }
  0x16   :  { %p2515_p10 = pnand %p2513_p9, %p2510_p8 }
  0x18   :  { %2518 = shalt.err (!%p2515_p10)
}
  0x19   :  { %s2519_s14 = scalar_lea.vmem %s42_s28, 32  ;;  %p2524_p12 = scmp.lt.s32.totalorder %s42_s28, %s42_s28 }
  0x1a   :  { %p2520_p11 = scmp.ne.s32.totalorder %s42_s28, %s2519_s14  ;;  %p2525_p13 = scmp.lt.s32.totalorder %s2519_s14, %s2519_s14 }
  0x1c   :  { %p2526_p0 = por %p2525_p13, %p2524_p12 }
  0x1e   :  { %p2527_p1 = pnand %p2526_p0, %p2520_p11 }
  0x20   :  { %2530 = shalt.err (!%p2527_p1)
}
  0x21   :  { %44 = dma.hbm_to_vmem [thread:$0]  %s3090_s3, 32, %s42_s28, [#allocation6]  }
  0x22   :  { %2553 = dma.done.wait [#allocation3], 32  }
  0x23   :  { %2554 = vsyncadd [#allocation3], 4294967264 }
  0x24   :  { %2555 = dma.done.wait [#allocation6], 32  }
  0x25   :  { %2556 = vsyncadd [#allocation6], 4294967264  ;;  %v2561_v0 = vmov 0.0   ;;  %vm2562_vm0 = vmmov 0   ;;  %vm91_vm1 = vcmask 1041408   ;;  %v70_v3 = vld [vmem:[%s3087_s0] sm:$0xff] }
  0x26   :  { %2088 = vmatprep.subr.bf16.mxu0 %v2561_v0  ;;  %2094 = vmatprep.subr.bf16.mxu1 %v2561_v0  ;;  %v74_v1 = vld [vmem:[%s3088_s1] sm:$0x3]  ;;  %v136_v2 = vld [vmem:[#allocation2] sm:$0x3]  ;;  %vm87_vm2 = vcmask 31744   ;;  %v71_v6 = vld [vmem:[%s3087_s0 + $0x8] sm:$0xff] }
  0x27   :  { %2090 = vmatprep.mubr.msk.bf16.mxu0 %vm2562_vm0, %v2561_v0  ;;  %2096 = vmatprep.mubr.msk.bf16.mxu1 %vm2562_vm0, %v2561_v0  ;;  %v93_v4 = vsel %vm91_vm1, %v74_v1, 0  ;;  %v145_v5 = vsel %vm91_vm1, %v136_v2, 0  ;;  %v2677_v7 = vld [vmem:[%s3091_s4] sm:$0xff]   ;;  %v2006_v8 = vpack.c.bf16 %v71_v6, %v70_v3  ;;  %v188_v9 = vld [vmem:[#allocation5] sm:$0x3]  ;;  %v2687_v11 = vld [vmem:[%s3091_s4 + $0x8] sm:$0xff]  }
  0x28   :  { %2089 = vmatpush3.bf16.msra.mxu0 %v93_v4  ;;  %2095 = vmatpush3.bf16.msra.mxu1 %v145_v5  ;;  %v197_v10 = vsel %vm91_vm1, %v188_v9, 0  ;;  %v2699_v12 = vld [vmem:[%s3092_s5] sm:$0xff]   ;;  %v2563_v14 = vmov 0   ;;  %v2712_v15 = vld [vmem:[%s3092_s5 + $0x8] sm:$0xff]   ;;  %vm480_vm3 = vcmask 1041409   ;;  %vm265_vm4 = vcmask 261120  }
  0x29   :  { %2106 = vmatprep.subr.bf16.mxu1 %v2561_v0  ;;  %2100 = vmatprep.subr.bf16.mxu0 %v2561_v0  ;;  %v2705_v13 = vld [vmem:[%s3093_s6] sm:$0xff]   ;;  %v2721_v16 = vld [vmem:[%s3093_s6 + $0x8] sm:$0xff]   ;;  %s2564_s30 = smov [#allocation7]   ;;  %vm1917_vm5 = vcmask 33792  }
  0x2a   :  { %v1935_v22 = vld [vmem:[%s3094_s7] ss:$0 sm:$0xff]  ;;  %s1925_s14 = sshll.u32 %s2564_s30, 4  ;;  %s1926_s14 = int_to_ptr.vmem [resolvable:$true] %s1925_s14 }
  0x2b   :  { %2091 = vmatmul.mubr.msk.bf16.vlgmr.msra.gmra.mrb[0].mxu0 %vm87_vm2, %v2006_v8  ;;  %2097 = vmatmul.mubr.msk.bf16.vlgmr.msra.gmra.mrb[0].mxu1 %vm87_vm2, %v2006_v8  ;;  %v1938_v40 = vld [vmem:[%s3095_s8] ss:$0 sm:$0xff]  ;;  %s2531_s2 = scalar_lea.vmem %s1926_s14, 32  ;;  %p2536_p3 = scmp.lt.s32.totalorder %s1926_s14, %s1926_s14 }
  0x2c   :  { %2107 = vmatpush3.bf16.msra.mxu1 %v2677_v7  ;;  %2101 = vmatpush3.bf16.msra.mxu0 %v197_v10  ;;  %v2763_v61 = vld [vmem:[%s3097_s10] ss:$0 sm:$0xff]  ;;  %p2532_p2 = scmp.ne.s32.totalorder %s1926_s14, %s2531_s2  ;;  %p2537_p4 = scmp.lt.s32.totalorder %s2531_s2, %s2531_s2 }
  0x2d   :  { %2108 = vmatprep.subr.bf16.mxu1 %v2561_v0  ;;  %2102 = vmatprep.mubr.msk.bf16.mxu0 %vm2562_vm0, %v2561_v0  ;;  %v1940_v3 = vld [vmem:[%s3096_s9] ss:$0 sm:$0xff] }
  0x2e   :  { %2110 = vmatprep.mubr.msk.bf16.mxu1 %vm2562_vm0, %v2561_v0  ;;  %2114 = vmatprep.subr.bf16.mxu0 %v2561_v0  ;;  %p2538_p5 = por %p2537_p4, %p2536_p3 }
  0x30   :  { %2109 = vmatpush3.bf16.msra.mxu1 %v2687_v11  ;;  %p2539_p6 = pnand %p2538_p5, %p2532_p2 }
  0x31   :  { %2122 = vmatprep.subr.bf16.mxu1 %v2561_v0 }
  0x33   :  { %2103 = vmatmul.mubr.msk.bf16.vlgmr.msra.gmra.mrb[4].mxu0 %vm87_vm2, %v2006_v8  ;;  %2111 = vmatmul.mubr.bf16.vlgmr.msra.gmra.mrb[4].mxu1 %v2563_v14 }
  0x34   :  { %2115 = vmatpush3.bf16.msra.mxu0 %v2699_v12  ;;  %2118 = vmatprep.mubr.msk.bf16.mxu0 %vm2562_vm0, %v2561_v0 }
  0x35   :  { %2116 = vmatprep.subr.bf16.mxu0 %v2561_v0  ;;  %2123 = vmatpush3.bf16.msra.mxu1 %v2705_v13 }
  0x36   :  { %2124 = vmatprep.subr.bf16.mxu1 %v2561_v0  ;;  %2126 = vmatprep.mubr.msk.bf16.mxu1 %vm2562_vm0, %v2561_v0 }
  0x38   :  { %2117 = vmatpush3.bf16.msra.mxu0 %v2712_v15 }
  0x39   :  { %2125 = vmatpush3.bf16.msra.mxu1 %v2721_v16  ;;  %2130 = vmatprep.subr.bf16.mxu0 %v2561_v0 }
  0x3a   :  { %2138 = vmatprep.subr.bf16.mxu1 %v2561_v0 }
  0x3b   :  { %2119 = vmatmul.mubr.bf16.vlgmr.msra.gmra.mrb[8].mxu0 %v2563_v14 }
  0x3c   :  { %2127 = vmatmul.mubr.bf16.vlgmr.msra.gmra.mrb[8].mxu1 %v2563_v14  ;;  %2131 = vmatpush3.bf16.msra.mxu0 %v2677_v7 }
  0x3d   :  { %2139 = vmatpush3.bf16.msra.mxu1 %v2699_v12  ;;  %2132 = vmatprep.subr.bf16.mxu0 %v2561_v0 }
  0x3e   :  { %2140 = vmatprep.subr.bf16.mxu1 %v2561_v0  ;;  %2134 = vmatprep.mubr.msk.bf16.mxu0 %vm2562_vm0, %v2561_v0 }
  0x3f   :  { %2142 = vmatprep.mubr.msk.bf16.mxu1 %vm2562_vm0, %v2561_v0 }
  0x40   :  { %2133 = vmatpush3.bf16.msra.mxu0 %v2687_v11 }
  0x41   :  { %2141 = vmatpush3.bf16.msra.mxu1 %v2712_v15  ;;  %2146 = vmatprep.subr.bf16.mxu0 %v2561_v0 }
  0x42   :  { %2154 = vmatprep.subr.bf16.mxu1 %v2561_v0 }
  0xfe   :  { %v181_v17 = vpop.f32.mrb[0].mxu1  ;;  %v129_v18 = vpop.f32.mrb[0].mxu0 }
  0xff   :  { %v2098_v19 = vpop.f32.mrb[1].mxu1  ;;  %v2092_v20 = vpop.f32.mrb[1].mxu0  ;;  %v2745_v26 = vadd.f32 %v1935_v22, %v129_v18  ;;  %v2754_v42 = vadd.f32 %v1938_v40, %v181_v17 }
 0x100   :  { %v184_v21 = vpop.f32.mrb[2].mxu1  ;;  %v132_v23 = vpop.f32.mrb[2].mxu0 }
 0x101   :  { %v2099_v24 = vpop.f32.mrb[3].mxu1  ;;  %v2093_v25 = vpop.f32.mrb[3].mxu0  ;;  %v2747_v29 = vadd.f32 %v1935_v22, %v132_v23  ;;  %v2756_v44 = vadd.f32 %v1938_v40, %v184_v21 }
 0x106   :  { %v303_v27 = vpop.f32.mrb[4].mxu1  ;;  %v233_v28 = vpop.f32.mrb[4].mxu0 }
 0x107   :  { %v310_v30 = vrot.slane %v303_v27, 1  ;;  %v313_v31 = vadd.f32 %v303_v27, %v2745_v26  ;;  %v2112_v32 = vpop.f32.mrb[5].mxu1  ;;  %v2104_v33 = vpop.f32.mrb[5].mxu0  ;;  %v2769_v8 = vadd.f32 %v1940_v3, %v233_v28 }
 0x108   :  { %v306_v34 = vpop.f32.mrb[6].mxu1  ;;  %v236_v35 = vpop.f32.mrb[6].mxu0 }
 0x109   :  { %v314_v36 = vadd.f32 %v310_v30, %v2747_v29  ;;  %v1944_v37 = vmul.f32 -1.442695, %v313_v31  ;;  %v2113_v38 = vpop.f32.mrb[7].mxu1  ;;  %v2105_v39 = vpop.f32.mrb[7].mxu0  ;;  %v2771_v14 = vadd.f32 %v1940_v3, %v236_v35 }
 0x10b   :  { %2320 = vpow2.f32 %v1944_v37  ;;  %v1945_v41 = vmul.f32 -1.442695, %v314_v36 }
 0x10d   :  { %2322 = vpow2.f32 %v1945_v41 }
 0x10e   :  { %v373_v43 = vpop.f32.mrb[8].mxu0 }
 0x10f   :  { %v380_v45 = vrot.slane %v373_v43, 1  ;;  %v383_v46 = vadd.f32 %v373_v43, %v2754_v42  ;;  %v2120_v47 = vpop.f32.mrb[9].mxu0  ;;  %v449_v48 = vpop.f32.mrb[8].mxu1 }
 0x110   :  { %v376_v49 = vpop.f32.mrb[10].mxu0  ;;  %v2128_v50 = vpop.f32.mrb[9].mxu1  ;;  %v450_v63 = vadd.f32 %v2763_v61, %v449_v48 }
 0x111   :  { %v384_v51 = vadd.f32 %v380_v45, %v2756_v44  ;;  %v1948_v52 = vmul.f32 -1.442695, %v383_v46  ;;  %v2121_v53 = vpop.f32.mrb[11].mxu0  ;;  %v452_v54 = vpop.f32.mrb[10].mxu1 }
 0x112   :  { %v2129_v55 = vpop.f32.mrb[11].mxu1  ;;  %v456_v5 = vrot.slane %v450_v63, 1 }
 0x113   :  { %2324 = vpow2.f32 %v1948_v52  ;;  %v1949_v56 = vmul.f32 -1.442695, %v384_v51 }
 0x115   :  { %v2321_v57 = vpop.eup %2320  ;;  %2326 = vpow2.f32 %v1949_v56 }
 0x116   :  { %v321_v58 = vadd.f32 1.0, %v2321_v57 }
 0x117   :  { %v2323_v59 = vpop.eup %2322 }
 0x118   :  { %v322_v60 = vadd.f32 1.0, %v2323_v59  ;;  %2328 = vrcp.f32 %v321_v58 }
 0x11a   :  { %2330 = vrcp.f32 %v322_v60 }
 0x11d   :  { %v2325_v62 = vpop.eup %2324 }
 0x11e   :  { %v391_v2 = vadd.f32 1.0, %v2325_v62 }
 0x11f   :  { %v2327_v1 = vpop.eup %2326 }
 0x120   :  { %v392_v4 = vadd.f32 1.0, %v2327_v1  ;;  %2332 = vrcp.f32 %v391_v2 }
 0x122   :  { %v2329_v6 = vpop.eup %2328  ;;  %2334 = vrcp.f32 %v392_v4 }
 0x123   :  { %v459_v9 = vmul.f32 %v2329_v6, %v450_v63 }
 0x124   :  { %v2331_v10 = vpop.eup %2330 }
 0x125   :  { %v460_v17 = vmul.f32 %v2331_v10, %v456_v5  ;;  %v461_v18 = vadd.f32 %v459_v9, %v2769_v8 }
 0x127   :  { %v462_v19 = vadd.f32 %v460_v17, %v2771_v14  ;;  %2336 = vtanh.f32 %v461_v18 }
 0x129   :  { %2338 = vtanh.f32 %v462_v19 }
 0x12a   :  { %v2333_v20 = vpop.eup %2332 }
 0x12b   :  { %v465_v22 = vsub.f32 1.0, %v2333_v20  ;;  %v469_v25 = vmul.f32 0.0, %v2333_v20 }
 0x12c   :  { %v2335_v21 = vpop.eup %2334 }
 0x12d   :  { %v466_v24 = vsub.f32 1.0, %v2335_v21  ;;  %v470_v30 = vmul.f32 0.0, %v2335_v21 }
 0x131   :  { %v2337_v23 = vpop.eup %2336 }
 0x132   :  { %v467_v27 = vmul.f32 %v2337_v23, %v465_v22 }
 0x133   :  { %v2339_v28 = vpop.eup %2338 }
 0x134   :  { %v468_v31 = vmul.f32 %v2339_v28, %v466_v24  ;;  %v2775_v32 = vadd.f32 %v469_v25, %v467_v27 }
 0x136   :  { %v2777_v33 = vadd.f32 %v470_v30, %v468_v31  ;;  %v473_v34 = vpack.c.bf16 %v2775_v32, %v2775_v32  ;;  %v658_v27 = vrot.slane %v2775_v32, 7 }
 0x138   :  { %v474_v35 = vpack.c.bf16 %v2777_v33, %v2777_v33  ;;  %v477_v37 = vunpack.c.l.b16 %v473_v34  ;;  %v659_v21 = vrot.slane %v2777_v33, 7 }
 0x13a   :  { %v478_v36 = vunpack.c.l.b16 %v474_v35 }
 0x13c   :  { %v479_v38 = vrot.slane %v478_v36, 7 }
 0x13e   :  { %v481_v39 = vsel %vm480_vm3, %v479_v38, %v477_v37 }
 0x13f   :  { %v482_v40 = vpack.c.b16 %v481_v39, %v481_v39 }
 0x141   :  { %2135 = vmatmul.mubr.msk.bf16.vlgmr.msra.gmra.mrb[12].mxu0 %vm265_vm4, %v482_v40  ;;  %2143 = vmatmul.mubr.msk.bf16.vlgmr.msra.gmra.mrb[12].mxu1 %vm265_vm4, %v482_v40 }
 0x142   :  { %2147 = vmatpush3.bf16.msra.mxu0 %v2705_v13  ;;  %2150 = vmatprep.mubr.msk.bf16.mxu0 %vm2562_vm0, %v2561_v0 }
 0x143   :  { %2148 = vmatprep.subr.bf16.mxu0 %v2561_v0  ;;  %2155 = vmatpush3.bf16.msra.mxu1 %v2677_v7 }
 0x144   :  { %2156 = vmatprep.subr.bf16.mxu1 %v2561_v0  ;;  %2158 = vmatprep.mubr.msk.bf16.mxu1 %vm2562_vm0, %v2561_v0 }
 0x146   :  { %2149 = vmatpush3.bf16.msra.mxu0 %v2721_v16 }
 0x147   :  { %2162 = vmatprep.subr.bf16.mxu0 %v2561_v0  ;;  %2157 = vmatpush3.bf16.msra.mxu1 %v2687_v11 }
 0x148   :  { %2170 = vmatprep.subr.bf16.mxu1 %v2561_v0 }
 0x149   :  { %2151 = vmatmul.mubr.msk.bf16.vlgmr.msra.gmra.mrb[16].mxu0 %vm265_vm4, %v482_v40 }
 0x14a   :  { %2163 = vmatpush3.bf16.msra.mxu0 %v2699_v12  ;;  %2166 = vmatprep.mubr.msk.bf16.mxu0 %vm2562_vm0, %v2561_v0 }
 0x14b   :  { %2164 = vmatprep.subr.bf16.mxu0 %v2561_v0 }
 0x14e   :  { %2165 = vmatpush3.bf16.msra.mxu0 %v2712_v15 }
 0x14f   :  { %2178 = vmatprep.subr.bf16.mxu0 %v2561_v0 }
 0x214   :  { %v520_v41 = vpop.f32.mrb[12].mxu0  ;;  %v578_v43 = vpop.f32.mrb[12].mxu1 }
 0x215   :  { %v527_v45 = vrot.slane %v520_v41, 7  ;;  %v531_v46 = vadd.f32 %v520_v41, %v2747_v29  ;;  %v585_v47 = vrot.slane %v578_v43, 7  ;;  %v589_v48 = vadd.f32 %v578_v43, %v2756_v44  ;;  %v2136_v49 = vpop.f32.mrb[13].mxu0  ;;  %v2144_v50 = vpop.f32.mrb[13].mxu1 }
 0x216   :  { %v523_v51 = vpop.f32.mrb[14].mxu0  ;;  %v581_v52 = vpop.f32.mrb[14].mxu1 }
 0x217   :  { %v530_v53 = vadd.f32 %v527_v45, %v2745_v26  ;;  %v1955_v54 = vmul.f32 -1.442695, %v531_v46  ;;  %v588_v55 = vadd.f32 %v585_v47, %v2754_v42  ;;  %v1958_v56 = vmul.f32 -1.442695, %v589_v48  ;;  %v2137_v57 = vpop.f32.mrb[15].mxu0  ;;  %v2145_v58 = vpop.f32.mrb[15].mxu1 }
 0x219   :  { %v1954_v59 = vmul.f32 -1.442695, %v530_v53  ;;  %2340 = vpow2.f32 %v1955_v54  ;;  %v1957_v60 = vmul.f32 -1.442695, %v588_v55 }
 0x21a   :  { %2342 = vpow2.f32 %v1958_v56 }
 0x21b   :  { %2344 = vpow2.f32 %v1954_v59 }
 0x21c   :  { %2346 = vpow2.f32 %v1957_v60  ;;  %v636_v62 = vpop.f32.mrb[16].mxu0 }
 0x21d   :  { %v2152_v63 = vpop.f32.mrb[17].mxu0  ;;  %v637_v19 = vadd.f32 %v2763_v61, %v636_v62 }
 0x21e   :  { %v639_v1 = vpop.f32.mrb[18].mxu0 }
 0x21f   :  { %v2153_v2 = vpop.f32.mrb[19].mxu0  ;;  %v643_v23 = vrot.slane %v637_v19, 7 }
 0x223   :  { %v2341_v3 = vpop.eup %2340 }
 0x224   :  { %v2343_v4 = vpop.eup %2342  ;;  %v539_v5 = vadd.f32 1.0, %v2341_v3 }
 0x225   :  { %v2345_v6 = vpop.eup %2344  ;;  %v597_v9 = vadd.f32 1.0, %v2343_v4 }
 0x226   :  { %v2347_v10 = vpop.eup %2346  ;;  %v538_v17 = vadd.f32 1.0, %v2345_v6  ;;  %2348 = vrcp.f32 %v539_v5 }
 0x227   :  { %v596_v18 = vadd.f32 1.0, %v2347_v10  ;;  %2350 = vrcp.f32 %v597_v9 }
 0x228   :  { %2352 = vrcp.f32 %v538_v17 }
 0x229   :  { %2354 = vrcp.f32 %v596_v18 }
 0x230   :  { %v2349_v20 = vpop.eup %2348 }
 0x231   :  { %v2351_v22 = vpop.eup %2350  ;;  %v647_v24 = vmul.f32 %v2349_v20, %v637_v19 }
 0x232   :  { %v2353_v25 = vpop.eup %2352  ;;  %v663_v28 = vmul.f32 %v2351_v22, %v659_v21  ;;  %v653_v37 = vsub.f32 1.0, %v2351_v22 }
 0x233   :  { %v2355_v30 = vpop.eup %2354  ;;  %v646_v31 = vmul.f32 %v2353_v25, %v643_v23  ;;  %v649_v34 = vadd.f32 %v647_v24, %v2771_v14 }
 0x234   :  { %v662_v35 = vmul.f32 %v2355_v30, %v658_v27  ;;  %v652_v39 = vsub.f32 1.0, %v2355_v30 }
 0x235   :  { %v648_v36 = vadd.f32 %v646_v31, %v2769_v8  ;;  %2356 = vtanh.f32 %v649_v34 }
 0x237   :  { %2358 = vtanh.f32 %v648_v36 }
 0x23f   :  { %v2357_v38 = vpop.eup %2356 }
 0x240   :  { %v655_v33 = vmul.f32 %v2357_v38, %v653_v37 }
 0x241   :  { %v2359_v40 = vpop.eup %2358 }
 0x242   :  { %v654_v41 = vmul.f32 %v2359_v40, %v652_v39  ;;  %v2814_v43 = vadd.f32 %v663_v28, %v655_v33 }
 0x244   :  { %v2816_v45 = vadd.f32 %v662_v35, %v654_v41  ;;  %v667_v46 = vpack.c.bf16 %v2814_v43, %v2814_v43  ;;  %v854_v41 = vrot.slane %v2814_v43, 7 }
 0x246   :  { %v666_v32 = vpack.c.bf16 %v2816_v45, %v2816_v45  ;;  %v671_v48 = vunpack.c.l.b16 %v667_v46  ;;  %v853_v39 = vrot.slane %v2816_v45, 7 }
 0x248   :  { %v670_v47 = vunpack.c.l.b16 %v666_v32 }
 0x24a   :  { %v672_v49 = vrot.slane %v670_v47, 1 }
 0x24c   :  { %v673_v50 = vsel %vm480_vm3, %v671_v48, %v672_v49 }
 0x24d   :  { %v674_v51 = vpack.c.b16 %v673_v50, %v673_v50 }
 0x24f   :  { %2159 = vmatmul.mubr.msk.bf16.vlgmr.msra.gmra.mrb[16].mxu1 %vm265_vm4, %v674_v51  ;;  %2167 = vmatmul.mubr.msk.bf16.vlgmr.msra.gmra.mrb[20].mxu0 %vm265_vm4, %v674_v51 }
 0x250   :  { %2171 = vmatpush3.bf16.msra.mxu1 %v2705_v13  ;;  %2174 = vmatprep.mubr.msk.bf16.mxu1 %vm2562_vm0, %v2561_v0 }
 0x251   :  { %2172 = vmatprep.subr.bf16.mxu1 %v2561_v0  ;;  %2179 = vmatpush3.bf16.msra.mxu0 %v2677_v7 }
 0x252   :  { %2180 = vmatprep.subr.bf16.mxu0 %v2561_v0  ;;  %2182 = vmatprep.mubr.msk.bf16.mxu0 %vm2562_vm0, %v2561_v0 }
 0x254   :  { %2173 = vmatpush3.bf16.msra.mxu1 %v2721_v16 }
 0x255   :  { %2186 = vmatprep.subr.bf16.mxu1 %v2561_v0  ;;  %2181 = vmatpush3.bf16.msra.mxu0 %v2687_v11 }
 0x256   :  { %2194 = vmatprep.subr.bf16.mxu0 %v2561_v0 }
 0x257   :  { %2175 = vmatmul.mubr.msk.bf16.vlgmr.msra.gmra.mrb[20].mxu1 %vm265_vm4, %v674_v51 }
 0x258   :  { %2187 = vmatpush3.bf16.msra.mxu1 %v2699_v12  ;;  %2190 = vmatprep.mubr.msk.bf16.mxu1 %vm2562_vm0, %v2561_v0 }
 0x259   :  { %2188 = vmatprep.subr.bf16.mxu1 %v2561_v0 }
 0x25c   :  { %2189 = vmatpush3.bf16.msra.mxu1 %v2712_v15 }
 0x25d   :  { %2202 = vmatprep.subr.bf16.mxu1 %v2561_v0 }
 0x322   :  { %v712_v52 = vpop.f32.mrb[16].mxu1  ;;  %v771_v53 = vpop.f32.mrb[20].mxu0 }
 0x323   :  { %v719_v54 = vrot.slane %v712_v52, 6  ;;  %v720_v55 = vrot.slane %v712_v52, 7  ;;  %v778_v56 = vrot.slane %v771_v53, 6  ;;  %v779_v57 = vrot.slane %v771_v53, 7  ;;  %v2160_v58 = vpop.f32.mrb[17].mxu1  ;;  %v2168_v59 = vpop.f32.mrb[21].mxu0 }
 0x324   :  { %v715_v60 = vpop.f32.mrb[18].mxu1  ;;  %v774_v62 = vpop.f32.mrb[22].mxu0 }
 0x325   :  { %v723_v63 = vadd.f32 %v719_v54, %v2745_v26  ;;  %v724_v1 = vadd.f32 %v720_v55, %v2747_v29  ;;  %v782_v2 = vadd.f32 %v778_v56, %v2754_v42  ;;  %v783_v3 = vadd.f32 %v779_v57, %v2756_v44  ;;  %v2161_v4 = vpop.f32.mrb[19].mxu1  ;;  %v2169_v5 = vpop.f32.mrb[23].mxu0 }
 0x327   :  { %v1961_v6 = vmul.f32 -1.442695, %v723_v63  ;;  %v1962_v9 = vmul.f32 -1.442695, %v724_v1  ;;  %v1964_v10 = vmul.f32 -1.442695, %v782_v2 }
 0x328   :  { %v1965_v17 = vmul.f32 -1.442695, %v783_v3 }
 0x329   :  { %2360 = vpow2.f32 %v1961_v6 }
 0x32a   :  { %2362 = vpow2.f32 %v1962_v9  ;;  %v830_v18 = vpop.f32.mrb[20].mxu1 }
 0x32b   :  { %2364 = vpow2.f32 %v1964_v10  ;;  %v2176_v19 = vpop.f32.mrb[21].mxu1  ;;  %v831_v34 = vadd.f32 %v2763_v61, %v830_v18 }
 0x32c   :  { %2366 = vpow2.f32 %v1965_v17  ;;  %v833_v20 = vpop.f32.mrb[22].mxu1 }
 0x32d   :  { %v2177_v21 = vpop.f32.mrb[23].mxu1  ;;  %v837_v35 = vrot.slane %v831_v34, 6  ;;  %v838_v37 = vrot.slane %v831_v34, 7 }
 0x333   :  { %v2361_v22 = vpop.eup %2360 }
 0x334   :  { %v2363_v23 = vpop.eup %2362  ;;  %v731_v24 = vadd.f32 1.0, %v2361_v22 }
 0x335   :  { %v2365_v25 = vpop.eup %2364  ;;  %v732_v27 = vadd.f32 1.0, %v2363_v23 }
 0x336   :  { %v2367_v28 = vpop.eup %2366  ;;  %2368 = vrcp.f32 %v731_v24  ;;  %v790_v30 = vadd.f32 1.0, %v2365_v25 }
 0x337   :  { %2370 = vrcp.f32 %v732_v27  ;;  %v791_v31 = vadd.f32 1.0, %v2367_v28 }
 0x338   :  { %2372 = vrcp.f32 %v790_v30 }
 0x339   :  { %2374 = vrcp.f32 %v791_v31 }
 0x340   :  { %v2369_v36 = vpop.eup %2368 }
 0x341   :  { %v2371_v38 = vpop.eup %2370  ;;  %v841_v33 = vmul.f32 %v2369_v36, %v837_v35 }
 0x342   :  { %v2373_v40 = vpop.eup %2372  ;;  %v842_v32 = vmul.f32 %v2371_v38, %v838_v37 }
 0x343   :  { %v2375_v46 = vpop.eup %2374  ;;  %v857_v47 = vmul.f32 %v2373_v40, %v853_v39  ;;  %v843_v48 = vadd.f32 %v841_v33, %v2769_v8  ;;  %v847_v51 = vsub.f32 1.0, %v2373_v40 }
 0x344   :  { %v858_v49 = vmul.f32 %v2375_v46, %v854_v41  ;;  %v844_v50 = vadd.f32 %v842_v32, %v2771_v14  ;;  %v848_v53 = vsub.f32 1.0, %v2375_v46 }
 0x345   :  { %2376 = vtanh.f32 %v843_v48 }
 0x346   :  { %2378 = vtanh.f32 %v844_v50 }
 0x34f   :  { %v2377_v52 = vpop.eup %2376 }
 0x350   :  { %v2379_v54 = vpop.eup %2378  ;;  %v849_v55 = vmul.f32 %v2377_v52, %v847_v51 }
 0x351   :  { %v850_v45 = vmul.f32 %v2379_v54, %v848_v53 }
 0x352   :  { %v2853_v56 = vadd.f32 %v857_v47, %v849_v55 }
 0x353   :  { %v2855_v57 = vadd.f32 %v858_v49, %v850_v45 }
 0x354   :  { %v861_v43 = vpack.c.bf16 %v2853_v56, %v2853_v56  ;;  %v1049_v54 = vrot.slane %v2853_v56, 7 }
 0x355   :  { %v862_v58 = vpack.c.bf16 %v2855_v57, %v2855_v57 }
 0x356   :  { %v865_v59 = vunpack.c.l.b16 %v861_v43  ;;  %v1050_v43 = vrot.slane %v2855_v57, 7 }
 0x357   :  { %v866_v60 = vunpack.c.l.b16 %v862_v58 }
 0x358   :  { %v867_v62 = vrot.slane %v865_v59, 2 }
 0x359   :  { %v868_v63 = vrot.slane %v866_v60, 1 }
 0x35b   :  { %v869_v1 = vsel %vm480_vm3, %v868_v63, %v867_v62 }
 0x35c   :  { %v870_v2 = vpack.c.b16 %v869_v1, %v869_v1 }
 0x35e   :  { %2183 = vmatmul.mubr.msk.bf16.vlgmr.msra.gmra.mrb[24].mxu0 %vm265_vm4, %v870_v2  ;;  %2191 = vmatmul.mubr.msk.bf16.vlgmr.msra.gmra.mrb[24].mxu1 %vm265_vm4, %v870_v2 }
 0x35f   :  { %2195 = vmatpush3.bf16.msra.mxu0 %v2705_v13  ;;  %2198 = vmatprep.mubr.msk.bf16.mxu0 %vm2562_vm0, %v2561_v0 }
 0x360   :  { %2196 = vmatprep.subr.bf16.mxu0 %v2561_v0  ;;  %2203 = vmatpush3.bf16.msra.mxu1 %v2677_v7 }
 0x361   :  { %2204 = vmatprep.subr.bf16.mxu1 %v2561_v0  ;;  %2206 = vmatprep.mubr.msk.bf16.mxu1 %vm2562_vm0, %v2561_v0 }
 0x363   :  { %2197 = vmatpush3.bf16.msra.mxu0 %v2721_v16 }
 0x364   :  { %2210 = vmatprep.subr.bf16.mxu0 %v2561_v0  ;;  %2205 = vmatpush3.bf16.msra.mxu1 %v2687_v11 }
 0x365   :  { %2218 = vmatprep.subr.bf16.mxu1 %v2561_v0 }
 0x366   :  { %2199 = vmatmul.mubr.msk.bf16.vlgmr.msra.gmra.mrb[28].mxu0 %vm265_vm4, %v870_v2 }
 0x367   :  { %2211 = vmatpush3.bf16.msra.mxu0 %v2699_v12  ;;  %2214 = vmatprep.mubr.msk.bf16.mxu0 %vm2562_vm0, %v2561_v0 }
 0x368   :  { %2212 = vmatprep.subr.bf16.mxu0 %v2561_v0 }
 0x36b   :  { %2213 = vmatpush3.bf16.msra.mxu0 %v2712_v15 }
 0x36c   :  { %2226 = vmatprep.subr.bf16.mxu0 %v2561_v0 }
 0x431   :  { %v908_v3 = vpop.f32.mrb[24].mxu0  ;;  %v967_v4 = vpop.f32.mrb[24].mxu1 }
 0x432   :  { %v915_v5 = vrot.slane %v908_v3, 5  ;;  %v916_v6 = vrot.slane %v908_v3, 6  ;;  %v974_v9 = vrot.slane %v967_v4, 5  ;;  %v975_v10 = vrot.slane %v967_v4, 6  ;;  %v2184_v17 = vpop.f32.mrb[25].mxu0  ;;  %v2192_v18 = vpop.f32.mrb[25].mxu1 }
 0x433   :  { %v911_v19 = vpop.f32.mrb[26].mxu0  ;;  %v970_v20 = vpop.f32.mrb[26].mxu1 }
 0x434   :  { %v919_v21 = vadd.f32 %v915_v5, %v2745_v26  ;;  %v920_v22 = vadd.f32 %v916_v6, %v2747_v29  ;;  %v978_v23 = vadd.f32 %v974_v9, %v2754_v42  ;;  %v979_v24 = vadd.f32 %v975_v10, %v2756_v44  ;;  %v2185_v25 = vpop.f32.mrb[27].mxu0  ;;  %v2193_v27 = vpop.f32.mrb[27].mxu1 }
 0x436   :  { %v1968_v28 = vmul.f32 -1.442695, %v919_v21  ;;  %v1969_v30 = vmul.f32 -1.442695, %v920_v22  ;;  %v1971_v31 = vmul.f32 -1.442695, %v978_v23 }
 0x437   :  { %v1972_v34 = vmul.f32 -1.442695, %v979_v24 }
 0x438   :  { %2380 = vpow2.f32 %v1968_v28 }
 0x439   :  { %2382 = vpow2.f32 %v1969_v30  ;;  %v1026_v35 = vpop.f32.mrb[28].mxu0 }
 0x43a   :  { %2384 = vpow2.f32 %v1971_v31  ;;  %v2200_v36 = vpop.f32.mrb[29].mxu0  ;;  %v1027_v49 = vadd.f32 %v2763_v61, %v1026_v35 }
 0x43b   :  { %2386 = vpow2.f32 %v1972_v34  ;;  %v1029_v37 = vpop.f32.mrb[30].mxu0 }
 0x43c   :  { %v2201_v38 = vpop.f32.mrb[31].mxu0  ;;  %v1033_v50 = vrot.slane %v1027_v49, 5  ;;  %v1034_v52 = vrot.slane %v1027_v49, 6 }
 0x442   :  { %v2381_v39 = vpop.eup %2380 }
 0x443   :  { %v2383_v33 = vpop.eup %2382  ;;  %v927_v40 = vadd.f32 1.0, %v2381_v39 }
 0x444   :  { %v2385_v41 = vpop.eup %2384  ;;  %v928_v32 = vadd.f32 1.0, %v2383_v33 }
 0x445   :  { %v2387_v46 = vpop.eup %2386  ;;  %2388 = vrcp.f32 %v927_v40  ;;  %v986_v47 = vadd.f32 1.0, %v2385_v41 }
 0x446   :  { %2390 = vrcp.f32 %v928_v32  ;;  %v987_v48 = vadd.f32 1.0, %v2387_v46 }
 0x447   :  { %2392 = vrcp.f32 %v986_v47 }
 0x448   :  { %2394 = vrcp.f32 %v987_v48 }
 0x44f   :  { %v2389_v51 = vpop.eup %2388 }
 0x450   :  { %v2391_v53 = vpop.eup %2390  ;;  %v1037_v55 = vmul.f32 %v2389_v51, %v1033_v50 }
 0x451   :  { %v2393_v45 = vpop.eup %2392  ;;  %v1038_v58 = vmul.f32 %v2391_v53, %v1034_v52 }
 0x452   :  { %v2395_v59 = vpop.eup %2394  ;;  %v1053_v60 = vmul.f32 %v2393_v45, %v1049_v54  ;;  %v1039_v62 = vadd.f32 %v1037_v55, %v2769_v8  ;;  %v1043_v2 = vsub.f32 1.0, %v2393_v45 }
 0x453   :  { %v1054_v63 = vmul.f32 %v2395_v59, %v1050_v43  ;;  %v1040_v1 = vadd.f32 %v1038_v58, %v2771_v14  ;;  %v1044_v4 = vsub.f32 1.0, %v2395_v59 }
 0x454   :  { %2396 = vtanh.f32 %v1039_v62 }
 0x455   :  { %2398 = vtanh.f32 %v1040_v1 }
 0x45e   :  { %v2397_v3 = vpop.eup %2396 }
 0x45f   :  { %v2399_v5 = vpop.eup %2398  ;;  %v1045_v6 = vmul.f32 %v2397_v3, %v1043_v2 }
 0x460   :  { %v1046_v56 = vmul.f32 %v2399_v5, %v1044_v4 }
 0x461   :  { %v2892_v9 = vadd.f32 %v1053_v60, %v1045_v6 }
 0x462   :  { %v2894_v10 = vadd.f32 %v1054_v63, %v1046_v56 }
 0x463   :  { %v1057_v57 = vpack.c.bf16 %v2892_v9, %v2892_v9  ;;  %v1245_v4 = vrot.slane %v2892_v9, 7 }
 0x464   :  { %v1058_v17 = vpack.c.bf16 %v2894_v10, %v2894_v10  ;;  %v1246_v56 = vrot.slane %v2894_v10, 7 }
 0x465   :  { %v1061_v18 = vunpack.c.l.b16 %v1057_v57 }
 0x466   :  { %v1062_v19 = vunpack.c.l.b16 %v1058_v17 }
 0x467   :  { %v1063_v20 = vrot.slane %v1061_v18, 3 }
 0x468   :  { %v1064_v21 = vrot.slane %v1062_v19, 2 }
 0x46a   :  { %v1065_v22 = vsel %vm480_vm3, %v1064_v21, %v1063_v20 }
 0x46b   :  { %v1066_v23 = vpack.c.b16 %v1065_v22, %v1065_v22 }
 0x46d   :  { %2207 = vmatmul.mubr.msk.bf16.vlgmr.msra.gmra.mrb[28].mxu1 %vm265_vm4, %v1066_v23  ;;  %2215 = vmatmul.mubr.msk.bf16.vlgmr.msra.gmra.mrb[32].mxu0 %vm265_vm4, %v1066_v23 }
 0x46e   :  { %2219 = vmatpush3.bf16.msra.mxu1 %v2705_v13  ;;  %2222 = vmatprep.mubr.msk.bf16.mxu1 %vm2562_vm0, %v2561_v0 }
 0x46f   :  { %2220 = vmatprep.subr.bf16.mxu1 %v2561_v0  ;;  %2227 = vmatpush3.bf16.msra.mxu0 %v2677_v7 }
 0x470   :  { %2228 = vmatprep.subr.bf16.mxu0 %v2561_v0  ;;  %2230 = vmatprep.mubr.msk.bf16.mxu0 %vm2562_vm0, %v2561_v0 }
 0x472   :  { %2221 = vmatpush3.bf16.msra.mxu1 %v2721_v16 }
 0x473   :  { %2234 = vmatprep.subr.bf16.mxu1 %v2561_v0  ;;  %2229 = vmatpush3.bf16.msra.mxu0 %v2687_v11 }
 0x474   :  { %2242 = vmatprep.subr.bf16.mxu0 %v2561_v0 }
 0x475   :  { %2223 = vmatmul.mubr.msk.bf16.vlgmr.msra.gmra.mrb[32].mxu1 %vm265_vm4, %v1066_v23 }
 0x476   :  { %2235 = vmatpush3.bf16.msra.mxu1 %v2699_v12  ;;  %2238 = vmatprep.mubr.msk.bf16.mxu1 %vm2562_vm0, %v2561_v0 }
 0x477   :  { %2236 = vmatprep.subr.bf16.mxu1 %v2561_v0 }
 0x47a   :  { %2237 = vmatpush3.bf16.msra.mxu1 %v2712_v15 }
 0x47b   :  { %2250 = vmatprep.subr.bf16.mxu1 %v2561_v0 }
 0x540   :  { %v1104_v7 = vpop.f32.mrb[28].mxu1  ;;  %v1163_v24 = vpop.f32.mrb[32].mxu0 }
 0x541   :  { %v1111_v25 = vrot.slane %v1104_v7, 4  ;;  %v1112_v27 = vrot.slane %v1104_v7, 5  ;;  %v1170_v28 = vrot.slane %v1163_v24, 4  ;;  %v1171_v30 = vrot.slane %v1163_v24, 5  ;;  %v2208_v31 = vpop.f32.mrb[29].mxu1  ;;  %v2216_v34 = vpop.f32.mrb[33].mxu0 }
 0x542   :  { %v1107_v35 = vpop.f32.mrb[30].mxu1  ;;  %v1166_v36 = vpop.f32.mrb[34].mxu0 }
 0x543   :  { %v1115_v37 = vadd.f32 %v1111_v25, %v2745_v26  ;;  %v1116_v38 = vadd.f32 %v1112_v27, %v2747_v29  ;;  %v1174_v39 = vadd.f32 %v1170_v28, %v2754_v42  ;;  %v1175_v33 = vadd.f32 %v1171_v30, %v2756_v44  ;;  %v2209_v40 = vpop.f32.mrb[31].mxu1  ;;  %v2217_v41 = vpop.f32.mrb[35].mxu0 }
 0x545   :  { %v1975_v32 = vmul.f32 -1.442695, %v1115_v37  ;;  %v1976_v46 = vmul.f32 -1.442695, %v1116_v38  ;;  %v1978_v47 = vmul.f32 -1.442695, %v1174_v39 }
 0x546   :  { %v1979_v48 = vmul.f32 -1.442695, %v1175_v33  ;;  %v2949_v39 = vld [vmem:[%s3091_s4] sm:$0xff]  }
 0x547   :  { %2400 = vpow2.f32 %v1975_v32 }
 0x548   :  { %2402 = vpow2.f32 %v1976_v46  ;;  %v1222_v49 = vpop.f32.mrb[32].mxu1 }
 0x549   :  { %2404 = vpow2.f32 %v1978_v47  ;;  %v2224_v50 = vpop.f32.mrb[33].mxu1  ;;  %v1223_v62 = vadd.f32 %v2763_v61, %v1222_v49 }
 0x54a   :  { %2406 = vpow2.f32 %v1979_v48  ;;  %v1225_v51 = vpop.f32.mrb[34].mxu1 }
 0x54b   :  { %v2225_v52 = vpop.f32.mrb[35].mxu1  ;;  %v1229_v63 = vrot.slane %v1223_v62, 4  ;;  %v1230_v2 = vrot.slane %v1223_v62, 5 }
 0x551   :  { %v2401_v53 = vpop.eup %2400 }
 0x552   :  { %v2403_v54 = vpop.eup %2402  ;;  %v1123_v55 = vadd.f32 1.0, %v2401_v53 }
 0x553   :  { %v2405_v45 = vpop.eup %2404  ;;  %v1124_v43 = vadd.f32 1.0, %v2403_v54 }
 0x554   :  { %v2407_v58 = vpop.eup %2406  ;;  %2408 = vrcp.f32 %v1123_v55  ;;  %v1182_v59 = vadd.f32 1.0, %v2405_v45 }
 0x555   :  { %2410 = vrcp.f32 %v1124_v43  ;;  %v1183_v60 = vadd.f32 1.0, %v2407_v58 }
 0x556   :  { %2412 = vrcp.f32 %v1182_v59 }
 0x557   :  { %2414 = vrcp.f32 %v1183_v60 }
 0x55e   :  { %v2409_v1 = vpop.eup %2408 }
 0x55f   :  { %v2411_v3 = vpop.eup %2410  ;;  %v1233_v5 = vmul.f32 %v2409_v1, %v1229_v63 }
 0x560   :  { %v2413_v6 = vpop.eup %2412  ;;  %v1234_v57 = vmul.f32 %v2411_v3, %v1230_v2 }
 0x561   :  { %v2415_v17 = vpop.eup %2414  ;;  %v1249_v18 = vmul.f32 %v2413_v6, %v1245_v4  ;;  %v1235_v19 = vadd.f32 %v1233_v5, %v2769_v8  ;;  %v1239_v22 = vsub.f32 1.0, %v2413_v6 }
 0x562   :  { %v1250_v20 = vmul.f32 %v2415_v17, %v1246_v56  ;;  %v1236_v21 = vadd.f32 %v1234_v57, %v2771_v14  ;;  %v1240_v7 = vsub.f32 1.0, %v2415_v17 }
 0x563   :  { %2416 = vtanh.f32 %v1235_v19 }
 0x564   :  { %2418 = vtanh.f32 %v1236_v21 }
 0x56d   :  { %v2417_v23 = vpop.eup %2416 }
 0x56e   :  { %v2419_v24 = vpop.eup %2418  ;;  %v1241_v25 = vmul.f32 %v2417_v23, %v1239_v22 }
 0x56f   :  { %v1242_v9 = vmul.f32 %v2419_v24, %v1240_v7 }
 0x570   :  { %v2931_v27 = vadd.f32 %v1249_v18, %v1241_v25 }
 0x571   :  { %v2933_v28 = vadd.f32 %v1250_v20, %v1242_v9 }
 0x572   :  { %v1253_v10 = vpack.c.bf16 %v2931_v27, %v2931_v27  ;;  %v1441_v20 = vrot.slane %v2931_v27, 7 }
 0x573   :  { %v1254_v30 = vpack.c.bf16 %v2933_v28, %v2933_v28  ;;  %v1442_v23 = vrot.slane %v2933_v28, 7 }
 0x574   :  { %v1257_v31 = vunpack.c.l.b16 %v1253_v10 }
 0x575   :  { %v1258_v34 = vunpack.c.l.b16 %v1254_v30 }
 0x576   :  { %v1259_v35 = vrot.slane %v1257_v31, 4 }
 0x577   :  { %v1260_v36 = vrot.slane %v1258_v34, 3 }
 0x579   :  { %v1261_v37 = vsel %vm480_vm3, %v1260_v36, %v1259_v35 }
 0x57a   :  { %v1262_v38 = vpack.c.b16 %v1261_v37, %v1261_v37 }
 0x57c   :  { %2231 = vmatmul.mubr.msk.bf16.vlgmr.msra.gmra.mrb[36].mxu0 %vm265_vm4, %v1262_v38  ;;  %2239 = vmatmul.mubr.msk.bf16.vlgmr.msra.gmra.mrb[36].mxu1 %vm265_vm4, %v1262_v38 }
 0x57d   :  { %2243 = vmatpush3.bf16.msra.mxu0 %v2705_v13  ;;  %2246 = vmatprep.mubr.msk.bf16.mxu0 %vm2562_vm0, %v2561_v0 }
 0x57e   :  { %2244 = vmatprep.subr.bf16.mxu0 %v2561_v0  ;;  %2251 = vmatpush3.bf16.msra.mxu1 %v2949_v39 }
 0x57f   :  { %2252 = vmatprep.subr.bf16.mxu1 %v2561_v0  ;;  %2254 = vmatprep.mubr.msk.bf16.mxu1 %vm2562_vm0, %v2561_v0 }
 0x581   :  { %2245 = vmatpush3.bf16.msra.mxu0 %v2721_v16 }
 0x582   :  { %2258 = vmatprep.subr.bf16.mxu0 %v2561_v0  ;;  %2253 = vmatpush3.bf16.msra.mxu1 %v2687_v11 }
 0x583   :  { %2266 = vmatprep.subr.bf16.mxu1 %v2561_v0 }
 0x584   :  { %2247 = vmatmul.mubr.msk.bf16.vlgmr.msra.gmra.mrb[40].mxu0 %vm265_vm4, %v1262_v38 }
 0x585   :  { %2259 = vmatpush3.bf16.msra.mxu0 %v2699_v12  ;;  %2262 = vmatprep.mubr.msk.bf16.mxu0 %vm2562_vm0, %v2561_v0 }
 0x586   :  { %2260 = vmatprep.subr.bf16.mxu0 %v2561_v0 }
 0x589   :  { %2261 = vmatpush3.bf16.msra.mxu0 %v2712_v15 }
 0x58a   :  { %2274 = vmatprep.subr.bf16.mxu0 %v2561_v0 }
 0x64f   :  { %v1300_v13 = vpop.f32.mrb[36].mxu0  ;;  %v1359_v16 = vpop.f32.mrb[36].mxu1 }
 0x650   :  { %v1307_v33 = vrot.slane %v1300_v13, 3  ;;  %v1308_v40 = vrot.slane %v1300_v13, 4  ;;  %v1366_v11 = vrot.slane %v1359_v16, 3  ;;  %v1367_v41 = vrot.slane %v1359_v16, 4  ;;  %v2232_v32 = vpop.f32.mrb[37].mxu0  ;;  %v2240_v46 = vpop.f32.mrb[37].mxu1 }
 0x651   :  { %v1303_v47 = vpop.f32.mrb[38].mxu0  ;;  %v1362_v48 = vpop.f32.mrb[38].mxu1  ;;  %v2989_v46 = vld [vmem:[%s3093_s6] sm:$0xff]  }
 0x652   :  { %v1311_v12 = vadd.f32 %v1307_v33, %v2745_v26  ;;  %v1312_v49 = vadd.f32 %v1308_v40, %v2747_v29  ;;  %v1370_v50 = vadd.f32 %v1366_v11, %v2754_v42  ;;  %v1371_v15 = vadd.f32 %v1367_v41, %v2756_v44  ;;  %v2233_v51 = vpop.f32.mrb[39].mxu0  ;;  %v2241_v52 = vpop.f32.mrb[39].mxu1  ;;  %v3002_v47 = vld [vmem:[%s3093_s6 + $0x8] sm:$0xff]  }
 0x653   :  { %v2483_v48 = vld [vmem:[%s3091_s4 + $0x8] sm:$0xff]  }
 0x654   :  { %v1982_v53 = vmul.f32 -1.442695, %v1311_v12  ;;  %v1983_v54 = vmul.f32 -1.442695, %v1312_v49  ;;  %v1985_v55 = vmul.f32 -1.442695, %v1370_v50 }
 0x655   :  { %v1986_v45 = vmul.f32 -1.442695, %v1371_v15  ;;  %v2485_v12 = vld [vmem:[%s3092_s5 + $0x8] sm:$0xff]  }
 0x656   :  { %2420 = vpow2.f32 %v1982_v53 }
 0x657   :  { %2422 = vpow2.f32 %v1983_v54  ;;  %v1418_v43 = vpop.f32.mrb[40].mxu0 }
 0x658   :  { %2424 = vpow2.f32 %v1985_v55  ;;  %v2248_v58 = vpop.f32.mrb[41].mxu0  ;;  %v1419_v56 = vadd.f32 %v2763_v61, %v1418_v43 }
 0x659   :  { %2426 = vpow2.f32 %v1986_v45  ;;  %v1421_v59 = vpop.f32.mrb[42].mxu0 }
 0x65a   :  { %v2249_v60 = vpop.f32.mrb[43].mxu0  ;;  %v1425_v57 = vrot.slane %v1419_v56, 3  ;;  %v1426_v18 = vrot.slane %v1419_v56, 4 }
 0x660   :  { %v2421_v62 = vpop.eup %2420 }
 0x661   :  { %v2423_v63 = vpop.eup %2422  ;;  %v1319_v1 = vadd.f32 1.0, %v2421_v62 }
 0x662   :  { %v2425_v2 = vpop.eup %2424  ;;  %v1320_v3 = vadd.f32 1.0, %v2423_v63 }
 0x663   :  { %v2427_v4 = vpop.eup %2426  ;;  %2428 = vrcp.f32 %v1319_v1  ;;  %v1378_v5 = vadd.f32 1.0, %v2425_v2 }
 0x664   :  { %2430 = vrcp.f32 %v1320_v3  ;;  %v1379_v6 = vadd.f32 1.0, %v2427_v4 }
 0x665   :  { %2432 = vrcp.f32 %v1378_v5 }
 0x666   :  { %2434 = vrcp.f32 %v1379_v6 }
 0x66d   :  { %v2429_v17 = vpop.eup %2428 }
 0x66e   :  { %v2431_v19 = vpop.eup %2430  ;;  %v1429_v21 = vmul.f32 %v2429_v17, %v1425_v57 }
 0x66f   :  { %v2433_v22 = vpop.eup %2432  ;;  %v1430_v7 = vmul.f32 %v2431_v19, %v1426_v18 }
 0x670   :  { %v2435_v24 = vpop.eup %2434  ;;  %v1445_v25 = vmul.f32 %v2433_v22, %v1441_v20  ;;  %v1431_v9 = vadd.f32 %v1429_v21, %v2769_v8  ;;  %v1435_v61 = vsub.f32 1.0, %v2433_v22 }
 0x671   :  { %v1446_v10 = vmul.f32 %v2435_v24, %v1442_v23  ;;  %v1432_v30 = vadd.f32 %v1430_v7, %v2771_v14  ;;  %v1436_v34 = vsub.f32 1.0, %v2435_v24 }
 0x672   :  { %2436 = vtanh.f32 %v1431_v9 }
 0x673   :  { %2438 = vtanh.f32 %v1432_v30 }
 0x67c   :  { %v2437_v31 = vpop.eup %2436 }
 0x67d   :  { %v2439_v35 = vpop.eup %2438  ;;  %v1437_v36 = vmul.f32 %v2437_v31, %v1435_v61 }
 0x67e   :  { %v1438_v27 = vmul.f32 %v2439_v35, %v1436_v34 }
 0x67f   :  { %v2975_v37 = vadd.f32 %v1445_v25, %v1437_v36  ;;  %v3028_v25 = vld [vmem:[%s3097_s10] ss:$0 sm:$0xff] }
 0x680   :  { %v2977_v38 = vadd.f32 %v1446_v10, %v1438_v27 }
 0x681   :  { %v1449_v28 = vpack.c.bf16 %v2975_v37, %v2975_v37  ;;  %v1637_v34 = vrot.slane %v2975_v37, 7 }
 0x682   :  { %v1450_v13 = vpack.c.bf16 %v2977_v38, %v2977_v38  ;;  %v1638_v27 = vrot.slane %v2977_v38, 7 }
 0x683   :  { %v1453_v16 = vunpack.c.l.b16 %v1449_v28 }
 0x684   :  { %v1454_v33 = vunpack.c.l.b16 %v1450_v13 }
 0x685   :  { %v1455_v40 = vrot.slane %v1453_v16, 5 }
 0x686   :  { %v1456_v11 = vrot.slane %v1454_v33, 4 }
 0x688   :  { %v1457_v41 = vsel %vm480_vm3, %v1456_v11, %v1455_v40 }
 0x689   :  { %v1458_v32 = vpack.c.b16 %v1457_v41, %v1457_v41 }
 0x68b   :  { %2255 = vmatmul.mubr.msk.bf16.vlgmr.msra.gmra.mrb[40].mxu1 %vm265_vm4, %v1458_v32  ;;  %2263 = vmatmul.mubr.msk.bf16.vlgmr.msra.gmra.mrb[44].mxu0 %vm265_vm4, %v1458_v32 }
 0x68c   :  { %2267 = vmatpush3.bf16.msra.mxu1 %v2989_v46  ;;  %2270 = vmatprep.mubr.msk.bf16.mxu1 %vm2562_vm0, %v2561_v0 }
 0x68d   :  { %2268 = vmatprep.subr.bf16.mxu1 %v2561_v0  ;;  %2275 = vmatpush3.bf16.msra.mxu0 %v2949_v39  ;;  %v2484_v39 = vld [vmem:[%s3092_s5] sm:$0xff]  }
 0x68e   :  { %2276 = vmatprep.subr.bf16.mxu0 %v2561_v0  ;;  %2278 = vmatprep.mubr.msk.bf16.mxu0 %vm2562_vm0, %v2561_v0 }
 0x690   :  { %2269 = vmatpush3.bf16.msra.mxu1 %v3002_v47 }
 0x691   :  { %2282 = vmatprep.subr.bf16.mxu1 %v2561_v0  ;;  %2277 = vmatpush3.bf16.msra.mxu0 %v2483_v48 }
 0x692   :  { %2290 = vmatprep.subr.bf16.mxu0 %v2561_v0 }
 0x693   :  { %2271 = vmatmul.mubr.msk.bf16.vlgmr.msra.gmra.mrb[44].mxu1 %vm265_vm4, %v1458_v32 }
 0x694   :  { %2283 = vmatpush3.bf16.msra.mxu1 %v2484_v39  ;;  %2286 = vmatprep.mubr.msk.bf16.mxu1 %vm2562_vm0, %v2561_v0 }
 0x695   :  { %2284 = vmatprep.subr.bf16.mxu1 %v2561_v0 }
 0x698   :  { %2285 = vmatpush3.bf16.msra.mxu1 %v2485_v12 }
 0x699   :  { %2298 = vmatprep.subr.bf16.mxu1 %v2561_v0 }
 0x75e   :  { %v1496_v49 = vpop.f32.mrb[40].mxu1  ;;  %v1555_v50 = vpop.f32.mrb[44].mxu0 }
 0x75f   :  { %v1503_v15 = vrot.slane %v1496_v49, 2  ;;  %v1504_v51 = vrot.slane %v1496_v49, 3  ;;  %v1562_v52 = vrot.slane %v1555_v50, 2  ;;  %v1563_v53 = vrot.slane %v1555_v50, 3  ;;  %v2256_v54 = vpop.f32.mrb[41].mxu1  ;;  %v2264_v55 = vpop.f32.mrb[45].mxu0 }
 0x760   :  { %v1499_v45 = vpop.f32.mrb[42].mxu1  ;;  %v1558_v43 = vpop.f32.mrb[46].mxu0 }
 0x761   :  { %v1507_v58 = vadd.f32 %v1503_v15, %v2745_v26  ;;  %v1508_v59 = vadd.f32 %v1504_v51, %v2747_v29  ;;  %v1566_v60 = vadd.f32 %v1562_v52, %v2754_v42  ;;  %v1567_v62 = vadd.f32 %v1563_v53, %v2756_v44  ;;  %v2257_v63 = vpop.f32.mrb[43].mxu1  ;;  %v2265_v1 = vpop.f32.mrb[47].mxu0  ;;  %v2318_v43 = vld [vmem:[%s3098_s11] sm:$0xff]  }
 0x763   :  { %v1989_v2 = vmul.f32 -1.442695, %v1507_v58  ;;  %v1990_v3 = vmul.f32 -1.442695, %v1508_v59  ;;  %v1992_v4 = vmul.f32 -1.442695, %v1566_v60 }
 0x764   :  { %v1993_v5 = vmul.f32 -1.442695, %v1567_v62 }
 0x765   :  { %2440 = vpow2.f32 %v1989_v2 }
 0x766   :  { %2442 = vpow2.f32 %v1990_v3  ;;  %v1614_v6 = vpop.f32.mrb[44].mxu1 }
 0x767   :  { %2444 = vpow2.f32 %v1992_v4  ;;  %v2272_v56 = vpop.f32.mrb[45].mxu1  ;;  %v1615_v9 = vadd.f32 %v3028_v25, %v1614_v6 }
 0x768   :  { %2446 = vpow2.f32 %v1993_v5  ;;  %v1617_v57 = vpop.f32.mrb[46].mxu1 }
 0x769   :  { %v2273_v17 = vpop.f32.mrb[47].mxu1  ;;  %v1621_v10 = vrot.slane %v1615_v9, 2  ;;  %v1622_v61 = vrot.slane %v1615_v9, 3 }
 0x76f   :  { %v2441_v18 = vpop.eup %2440 }
 0x770   :  { %v2443_v19 = vpop.eup %2442  ;;  %v1515_v20 = vadd.f32 1.0, %v2441_v18 }
 0x771   :  { %v2445_v21 = vpop.eup %2444  ;;  %v1516_v22 = vadd.f32 1.0, %v2443_v19 }
 0x772   :  { %v2447_v23 = vpop.eup %2446  ;;  %2448 = vrcp.f32 %v1515_v20  ;;  %v1574_v7 = vadd.f32 1.0, %v2445_v21 }
 0x773   :  { %2450 = vrcp.f32 %v1516_v22  ;;  %v1575_v24 = vadd.f32 1.0, %v2447_v23 }
 0x774   :  { %2452 = vrcp.f32 %v1574_v7 }
 0x775   :  { %2454 = vrcp.f32 %v1575_v24 }
 0x77c   :  { %v2449_v30 = vpop.eup %2448 }
 0x77d   :  { %v2451_v31 = vpop.eup %2450  ;;  %v1625_v35 = vmul.f32 %v2449_v30, %v1621_v10 }
 0x77e   :  { %v2453_v36 = vpop.eup %2452  ;;  %v1626_v28 = vmul.f32 %v2451_v31, %v1622_v61 }
 0x77f   :  { %v2455_v13 = vpop.eup %2454  ;;  %v1641_v16 = vmul.f32 %v2453_v36, %v1637_v34  ;;  %v1627_v33 = vadd.f32 %v1625_v35, %v2769_v8  ;;  %v1631_v41 = vsub.f32 1.0, %v2453_v36 }
 0x780   :  { %v1642_v40 = vmul.f32 %v2455_v13, %v1638_v27  ;;  %v1628_v11 = vadd.f32 %v1626_v28, %v2771_v14  ;;  %v1632_v48 = vsub.f32 1.0, %v2455_v13 }
 0x781   :  { %2456 = vtanh.f32 %v1627_v33 }
 0x782   :  { %2458 = vtanh.f32 %v1628_v11 }
 0x78b   :  { %v2457_v32 = vpop.eup %2456 }
 0x78c   :  { %v2459_v39 = vpop.eup %2458  ;;  %v1633_v12 = vmul.f32 %v2457_v32, %v1631_v41 }
 0x78d   :  { %v1634_v37 = vmul.f32 %v2459_v39, %v1632_v48 }
 0x78e   :  { %v3035_v49 = vadd.f32 %v1641_v16, %v1633_v12 }
 0x78f   :  { %v3037_v50 = vadd.f32 %v1642_v40, %v1634_v37 }
 0x790   :  { %v1645_v38 = vpack.c.bf16 %v3035_v49, %v3035_v49  ;;  %v1833_v28 = vrot.slane %v3035_v49, 7 }
 0x791   :  { %v1646_v15 = vpack.c.bf16 %v3037_v50, %v3037_v50  ;;  %v1834_v33 = vrot.slane %v3037_v50, 7 }
 0x792   :  { %v1649_v51 = vunpack.c.l.b16 %v1645_v38 }
 0x793   :  { %v1650_v52 = vunpack.c.l.b16 %v1646_v15 }
 0x794   :  { %v1651_v53 = vrot.slane %v1649_v51, 6 }
 0x795   :  { %v1652_v54 = vrot.slane %v1650_v52, 5 }
 0x797   :  { %v1653_v55 = vsel %vm480_vm3, %v1652_v54, %v1651_v53 }
 0x798   :  { %v1654_v45 = vpack.c.b16 %v1653_v55, %v1653_v55 }
 0x79a   :  { %2279 = vmatmul.mubr.msk.bf16.vlgmr.msra.gmra.mrb[48].mxu0 %vm265_vm4, %v1654_v45  ;;  %2287 = vmatmul.mubr.msk.bf16.vlgmr.msra.gmra.mrb[48].mxu1 %vm265_vm4, %v1654_v45 }
 0x79b   :  { %2291 = vmatpush3.bf16.msra.mxu0 %v2989_v46  ;;  %2294 = vmatprep.mubr.msk.bf16.mxu0 %vm2562_vm0, %v2561_v0  ;;  %v2319_v46 = vld [vmem:[%s3098_s11 + $0x8] sm:$0xff]  }
 0x79c   :  { %2292 = vmatprep.subr.bf16.mxu0 %v2561_v0  ;;  %2302 = vmatprep.mubr.msk.bf16.mxu1 %vm2562_vm0, %v2561_v0 }
 0x79d   :  { %2299 = vmatpush3.bf16.msra.mxu1 %v2318_v43 }
 0x79e   :  { %2300 = vmatprep.subr.bf16.mxu1 %v2561_v0 }
 0x79f   :  { %2293 = vmatpush3.bf16.msra.mxu0 %v3002_v47 }
 0x7a1   :  { %2301 = vmatpush3.bf16.msra.mxu1 %v2319_v46 }
 0x7a2   :  { %2295 = vmatmul.mubr.msk.bf16.vlgmr.msra.gmra.mrb[52].mxu0 %vm265_vm4, %v1654_v45 }
 0x86d   :  { %v1692_v58 = vpop.f32.mrb[48].mxu0  ;;  %v1751_v59 = vpop.f32.mrb[48].mxu1 }
 0x86e   :  { %v1699_v60 = vrot.slane %v1692_v58, 1  ;;  %v1700_v62 = vrot.slane %v1692_v58, 2  ;;  %v1758_v63 = vrot.slane %v1751_v59, 1  ;;  %v1759_v47 = vrot.slane %v1751_v59, 2  ;;  %v2280_v1 = vpop.f32.mrb[49].mxu0  ;;  %v2288_v2 = vpop.f32.mrb[49].mxu1 }
 0x86f   :  { %v1695_v3 = vpop.f32.mrb[50].mxu0  ;;  %v1754_v4 = vpop.f32.mrb[50].mxu1 }
 0x870   :  { %v1703_v5 = vadd.f32 %v1699_v60, %v2745_v26  ;;  %v1704_v6 = vadd.f32 %v1700_v62, %v2747_v29  ;;  %v1762_v56 = vadd.f32 %v1758_v63, %v2754_v42  ;;  %v1763_v57 = vadd.f32 %v1759_v47, %v2756_v44  ;;  %v2281_v0 = vpop.f32.mrb[51].mxu0  ;;  %v2289_v17 = vpop.f32.mrb[51].mxu1 }
 0x872   :  { %v1996_v18 = vmul.f32 -1.442695, %v1703_v5  ;;  %v1997_v19 = vmul.f32 -1.442695, %v1704_v6  ;;  %v1999_v20 = vmul.f32 -1.442695, %v1762_v56 }
 0x873   :  { %v2000_v21 = vmul.f32 -1.442695, %v1763_v57 }
 0x874   :  { %2460 = vpow2.f32 %v1996_v18 }
 0x875   :  { %2462 = vpow2.f32 %v1997_v19  ;;  %v1810_v22 = vpop.f32.mrb[52].mxu0 }
 0x876   :  { %2464 = vpow2.f32 %v1999_v20  ;;  %v2296_v23 = vpop.f32.mrb[53].mxu0  ;;  %v1811_v31 = vadd.f32 %v3028_v25, %v1810_v22 }
 0x877   :  { %2466 = vpow2.f32 %v2000_v21  ;;  %v1813_v7 = vpop.f32.mrb[54].mxu0 }
 0x878   :  { %v2297_v26 = vpop.f32.mrb[55].mxu0  ;;  %v1817_v34 = vrot.slane %v1811_v31, 1  ;;  %v1818_v36 = vrot.slane %v1811_v31, 2 }
 0x87e   :  { %v2461_v24 = vpop.eup %2460 }
 0x87f   :  { %v2463_v29 = vpop.eup %2462  ;;  %v1711_v9 = vadd.f32 1.0, %v2461_v24 }
 0x880   :  { %v2465_v42 = vpop.eup %2464  ;;  %v1712_v10 = vadd.f32 1.0, %v2463_v29 }
 0x881   :  { %v2467_v44 = vpop.eup %2466  ;;  %2468 = vrcp.f32 %v1711_v9  ;;  %v1770_v30 = vadd.f32 1.0, %v2465_v42 }
 0x882   :  { %2470 = vrcp.f32 %v1712_v10  ;;  %v1771_v61 = vadd.f32 1.0, %v2467_v44 }
 0x883   :  { %2472 = vrcp.f32 %v1770_v30 }
 0x884   :  { %2474 = vrcp.f32 %v1771_v61 }
 0x88b   :  { %v2469_v35 = vpop.eup %2468 }
 0x88c   :  { %v2471_v27 = vpop.eup %2470  ;;  %v1821_v13 = vmul.f32 %v2469_v35, %v1817_v34 }
 0x88d   :  { %v2473_v16 = vpop.eup %2472  ;;  %v1822_v40 = vmul.f32 %v2471_v27, %v1818_v36 }
 0x88e   :  { %v2475_v11 = vpop.eup %2474  ;;  %v1837_v41 = vmul.f32 %v2473_v16, %v1833_v28  ;;  %v1823_v32 = vadd.f32 %v1821_v13, %v2769_v8  ;;  %v1827_v25 = vsub.f32 1.0, %v2473_v16 }
 0x88f   :  { %v1838_v48 = vmul.f32 %v2475_v11, %v1834_v33  ;;  %v1824_v39 = vadd.f32 %v1822_v40, %v2771_v14  ;;  %v1828_v37 = vsub.f32 1.0, %v2475_v11  ;;  %v2002_v14 = vld [vmem:[%s3099_s12] ss:$0 sm:$0xff] }
 0x890   :  { %2476 = vtanh.f32 %v1823_v32 }
 0x891   :  { %2478 = vtanh.f32 %v1824_v39 }
 0x89a   :  { %v2477_v12 = vpop.eup %2476 }
 0x89b   :  { %v2479_v38 = vpop.eup %2478  ;;  %v1829_v15 = vmul.f32 %v2477_v12, %v1827_v25 }
 0x89c   :  { %v1830_v49 = vmul.f32 %v2479_v38, %v1828_v37 }
 0x89d   :  { %v1839_v51 = vadd.f32 %v1837_v41, %v1829_v15 }
 0x89e   :  { %v1840_v52 = vadd.f32 %v1838_v48, %v1830_v49 }
 0x89f   :  { %v1841_v53 = vpack.c.bf16 %v1839_v51, %v1839_v51 }
 0x8a0   :  { %v1842_v50 = vpack.c.bf16 %v1840_v52, %v1840_v52 }
 0x8a1   :  { %v1856_v54 = vunpack.c.l.b16 %v1841_v53 }
 0x8a2   :  { %v1857_v55 = vunpack.c.l.b16 %v1842_v50 }
 0x8a3   :  { %v1858_v45 = vrot.slane %v1856_v54, 7 }
 0x8a4   :  { %v1859_v43 = vrot.slane %v1857_v55, 6 }
 0x8a6   :  { %v1860_v8 = vsel %vm480_vm3, %v1859_v43, %v1858_v45 }
 0x8a7   :  { %v1861_v46 = vpack.c.b16 %v1860_v8, %v1860_v8 }
 0x8a9   :  { %2303 = vmatmul.mubr.msk.bf16.vlgmr.msra.gmra.mrb[52].mxu1 %vm265_vm4, %v1861_v46 }
 0x97c   :  { %v1911_v58 = vpop.f32.mrb[52].mxu1 }
 0x97d   :  { %v1912_v59 = vadd.f32 %v2002_v14, %v1911_v58  ;;  %v2304_v60 = vpop.f32.mrb[53].mxu1 }
 0x97e   :  { %v1914_v62 = vpop.f32.mrb[54].mxu1 }
 0x97f   :  { %v2305_v63 = vpop.f32.mrb[55].mxu1  ;;  %1918 = vst.msk [vmem:[#allocation7] sm:$0x3] %vm1917_vm5, %v1912_v59 }
 0x980   :  { %2542 = shalt.err (!%p2539_p6)
}
 0x981   :  { %s2543_s12 = scalar_lea.hbm %s3100_s13, 32 }
 0x982   :  { %p2544_p7 = scmp.ne.s32.totalorder %s3100_s13, %s2543_s12  ;;  %p2547_p8 = scmp.lt.u32.totalorder %s2543_s12, %s3100_s13 }
 0x984   :  { %p2549_p9 = pnand %p2547_p8, %p2544_p7 }
 0x986   :  { %2552 = shalt.err (!%p2549_p9)
}
 0x987   :  { %1928 = dma.vmem_to_hbm [thread:$0]  %s1926_s14, 32, %s3100_s13, [#allocation4]  }
 0x988   :  { %2557 = dma.done.wait [#allocation4], 32  }
 0x989   :  { %2558 = vsyncadd [#allocation4], 4294967264 }
 0x98a   :  { %1932 = vsyncpa [#allocation3], 1 }
 0x98b   :  { %1933 = vsyncpa [#allocation6], 1 }
 0x98c   :  { %1934 = vsyncpa [#allocation4], 1 }

</bundles_post_ra>
